<compile_context>
chip_gen: v7x
topology: tpu7x:2x2x1
jax: 0.10.0
libtpu: 0.0.40
codegen_flags: <defaults>
</compile_context>

<pallas_src>
import functools

import jax
import jax.numpy as jnp
from jax import lax
from jax.experimental import pallas as pl
from jax.experimental.pallas import tpu as pltpu

CFG = dict(vocab=100, type_vocab=2, max_pos=16,
           hidden=32, heads=4, intermediate=64, layers=2)


# ---------------------------------------------------------------------------
# In-kernel helpers (statistics / transcendentals in f32 for v5e safety)
# ---------------------------------------------------------------------------

def _layernorm(x, g, b, eps=1e-12):
    x = x.astype(jnp.float32)
    mu = jnp.mean(x, axis=-1, keepdims=True)
    var = jnp.mean(jnp.square(x - mu), axis=-1, keepdims=True)
    return (x - mu) * lax.rsqrt(var + eps) * g + b


def _gelu(y):
    # TODO(synk): HF BERT uses exact erf GELU; tanh approximation used here.
    c = jnp.float32(0.7978845608028654)  # sqrt(2/pi)
    return 0.5 * y * (1.0 + jnp.tanh(c * (y + 0.044715 * y * y * y)))


def _bf16(x):
    return x.astype(jnp.bfloat16)


# ---------------------------------------------------------------------------
# Fused encoder kernel: embedding-LN + all transformer layers + mean/max pool
# ---------------------------------------------------------------------------

def _encoder_kernel(x_emb_ref, mask_ref, emb_g_ref, emb_b_ref,
                    wqkv_t_ref, bqkv_t_ref, wo_ref, bo_ref,
                    ln1_g_ref, ln1_b_ref, wi_ref, bi_ref,
                    wf_ref, bf_ref, ln2_g_ref, ln2_b_ref,
                    pool_ref,
                    x_scr,
                    *, nh, dh, H, Bt, S):
    l = pl.program_id(1)

    @pl.when(l == 0)
    def _():
        # Embedding LayerNorm fused into the first layer step (fresh per block).
        x_scr[...] = _layernorm(x_emb_ref[0], emb_g_ref[...], emb_b_ref[...])

    x = x_scr[...]                        # (Bt*S, H) f32, resident across layers
    addmask = mask_ref[0]                 # (Bt*S, Bt*S) additive mask
                                          # (key padding + cross-sequence block diag)

    # ---- fused QKV projection (pre-transposed weight): heads land on the
    # sublane axis -> all head slices below are 8-aligned sublane windows.
    # 1/sqrt(dh) already folded into the Q rows of the weight/bias.
    qkv_t = lax.dot_general(
        wqkv_t_ref[0], _bf16(x), (((1,), (1,)), ((), ())),
        preferred_element_type=jnp.float32) + bqkv_t_ref[0]         # (3H, Bt*S)

    # ---- attention, per head (static unroll). Contexts are assembled in
    # registers (no scratch roundtrip). TODO(synk): at real BERT scale replace
    # the materialized score tile with a flash-style KV-blocked online softmax.
    ctx_parts = []
    for h in range(nh):
        q = _bf16(qkv_t[h * dh:(h + 1) * dh, :])                    # (dh, Bt*S)
        k = _bf16(qkv_t[H + h * dh:H + (h + 1) * dh, :])            # (dh, Bt*S)
        v = _bf16(qkv_t[2 * H + h * dh:2 * H + (h + 1) * dh, :])    # (dh, Bt*S)
        s = lax.dot_general(q, k, (((0,), (0,)), ((), ())),
                            preferred_element_type=jnp.float32)     # (Bt*S, Bt*S)
        s = s + addmask
        s = s - jnp.max(s, axis=-1, keepdims=True)
        p = jnp.exp(s)
        p = p * pl.reciprocal(jnp.sum(p, axis=-1, keepdims=True), approx=True)
        ctx_parts.append(lax.dot_general(
            v, _bf16(p), (((1,), (1,)), ((), ())),
            preferred_element_type=jnp.float32))                    # (dh, Bt*S)
    ctx_t = jnp.concatenate(ctx_parts, axis=0)                      # (H, Bt*S)

    # ---- attention output projection + residual + LayerNorm (all in VMEM)
    attn = lax.dot_general(
        _bf16(ctx_t), wo_ref[0], (((0,), (0,)), ((), ())),
        preferred_element_type=jnp.float32) + bo_ref[0]             # (Bt*S, H)
    x = _layernorm(x + attn, ln1_g_ref[0], ln1_b_ref[0])

    # ---- FFN (GELU) + residual + LayerNorm
    ff = jnp.dot(_bf16(x), wi_ref[0],
                 preferred_element_type=jnp.float32) + bi_ref[0]    # (Bt*S, I)
    ff = _gelu(ff)
    ff = jnp.dot(_bf16(ff), wf_ref[0],
                 preferred_element_type=jnp.float32) + bf_ref[0]    # (Bt*S, H)
    x = _layernorm(x + ff, ln2_g_ref[0], ln2_b_ref[0])
    x_scr[...] = x

    # ---- after the last layer: mean+max pooling per sequence, emitted as a
    # single lane-dense [mean | max] row of width 2H per sequence.
    # (Pooling includes padded positions, matching torch.mean/max on raw o1.)
    @pl.when(l == pl.num_programs(1) - 1)
    def _():
        rows = []
        for b in range(Bt):
            xb = x[b * S:(b + 1) * S, :]                            # (S, H)
            rows.append(jnp.concatenate(
                [jnp.mean(xb, axis=0, keepdims=True),
                 jnp.max(xb, axis=0, keepdims=True)], axis=-1))     # (1, 2H)
        pool_ref[0] = jnp.concatenate(rows, axis=0)                 # (Bt, 2H)


def fused_encoder_pool(x_emb, addmask, fp, cfg, batch_block=None):
    B, S, H = x_emb.shape
    L = fp["wqkv_t"].shape[0]
    I = fp["wi"].shape[-1]
    nh = cfg["heads"]
    dh = H // nh

    # Pack Bt sequences per batch block: per-layer weights are fetched only
    # B/Bt times total (amortized over Bt sequences) and the elementwise path
    # fills Bt*S sublanes per vreg instead of S.
    Bt = B if batch_block is None else max(1, min(batch_block, B))
    assert B % Bt == 0
    nb = B // Bt
    BS = Bt * S

    x_emb_p = x_emb.reshape(nb, BS, H)

    # Combined additive attention mask per batch block:
    #   key-padding (-1e4 on padded keys, broadcast over query rows)
    # + block-diagonal penalty (-1e4) that stops cross-sequence attention
    #   inside a packed block (exp(-1e4 - max) underflows to exactly 0 in f32,
    #   so packed attention is numerically identical to per-sequence attention).
    kp = addmask.reshape(nb, 1, BS)
    seg = jnp.arange(BS) // S
    cross = jnp.where(seg[:, None] == seg[None, :], 0.0, -1e4).astype(jnp.float32)
    full_mask = kp + cross[None, :, :]                              # (nb, BS, BS)

    bmap = lambda bb, l: (bb, 0, 0)   # per batch-block, constant across layers
    lmap = lambda bb, l: (l, 0, 0)    # per-layer weights (pipelined prefetch; block
                                      # index constant over inner steps -> one fetch/layer)
    cmap = lambda bb, l: (0, 0)       # shared embedding-LN params

    kernel = functools.partial(_encoder_kernel, nh=nh, dh=dh, H=H, Bt=Bt, S=S)

    pool = pl.pallas_call(
        kernel,
        out_shape=jax.ShapeDtypeStruct((nb, Bt, 2 * H), jnp.float32),
        grid_spec=pltpu.PrefetchScalarGridSpec(
            num_scalar_prefetch=0,
            grid=(nb, L),
            in_specs=[
                pl.BlockSpec((1, BS, H), bmap),        # packed summed embeddings
                pl.BlockSpec((1, BS, BS), bmap),       # combined additive attn mask
                pl.BlockSpec((1, H), cmap),            # emb LN gamma
                pl.BlockSpec((1, H), cmap),            # emb LN beta
                # TODO(synk): at real scale add pipeline_mode=pl.Buffered(3) on
                # wqkv_t / wi / wf and raise vmem_limit_bytes (v5e/v6e).
                pl.BlockSpec((1, 3 * H, H), lmap),     # fused QKV weight (T, bf16, Q rows pre-scaled)
                pl.BlockSpec((1, 3 * H, 1), lmap),     # fused QKV bias (column)
                pl.BlockSpec((1, H, H), lmap),         # attn out weight (bf16)
                pl.BlockSpec((1, 1, H), lmap),         # attn out bias
                pl.BlockSpec((1, 1, H), lmap),         # LN1 gamma
                pl.BlockSpec((1, 1, H), lmap),         # LN1 beta
                pl.BlockSpec((1, H, I), lmap),         # FFN in weight (bf16)
                pl.BlockSpec((1, 1, I), lmap),         # FFN in bias
                pl.BlockSpec((1, I, H), lmap),         # FFN out weight (bf16)
                pl.BlockSpec((1, 1, H), lmap),         # FFN out bias
                pl.BlockSpec((1, 1, H), lmap),         # LN2 gamma
                pl.BlockSpec((1, 1, H), lmap),         # LN2 beta
            ],
            out_specs=pl.BlockSpec((1, Bt, 2 * H), bmap),
            scratch_shapes=[
                # Resident activations across the layer axis.
                # TODO(synk): cast to bf16 at real scale on v7x (64 MiB VMEM).
                pltpu.VMEM((BS, H), jnp.float32),
            ],
        ),
        compiler_params=pltpu.CompilerParams(
            # batch-block axis parallel (keeps v7x's second TensorCore busy when
            # nb > 1); layer axis carries state in scratch -> arbitrary.
            dimension_semantics=("parallel", "arbitrary"),
            # Above v5e's 16 MiB default scoped limit; safely below v7x's 64 MiB
            # physical VMEM. Raise toward ~48-100 MiB at real BERT-base scale.
            vmem_limit_bytes=32 * 1024 * 1024,
        ),
    )(x_emb_p, full_mask, fp["emb_ln_g"], fp["emb_ln_b"],
      fp["wqkv_t"], fp["bqkv_t"], fp["wo"], fp["bo"],
      fp["ln1_g"], fp["ln1_b"], fp["wi"], fp["bi"],
      fp["wf"], fp["bf"], fp["ln2_g"], fp["ln2_b"])

    return pool.reshape(B, 2 * H)       # cat([mean, max], 1) per sequence


# ---------------------------------------------------------------------------
# Mini-BERT parameter init (deterministic) + one-time parameter fusion
# ---------------------------------------------------------------------------

def init_params(key, cfg):
    H, I = cfg["hidden"], cfg["intermediate"]

    def nrm(k, shape, scale=0.02):
        return scale * jax.random.normal(k, shape, dtype=jnp.float32)

    keys = iter(jax.random.split(key, 64))
    params = {
        "word_emb": nrm(next(keys), (cfg["vocab"], H)),
        "pos_emb":  nrm(next(keys), (cfg["max_pos"], H)),
        "type_emb": nrm(next(keys), (cfg["type_vocab"], H)),
        "emb_ln_g": jnp.ones((H,), jnp.float32),
        "emb_ln_b": jnp.zeros((H,), jnp.float32),
        "layers": [],
        "w_out": nrm(next(keys), (2 * H, 1)),   # nn.Linear(768*2, 1) analogue
        "b_out": jnp.zeros((1,), jnp.float32),
    }
    for _ in range(cfg["layers"]):
        params["layers"].append({
            "wq": nrm(next(keys), (H, H)), "bq": jnp.zeros((H,), jnp.float32),
            "wk": nrm(next(keys), (H, H)), "bk": jnp.zeros((H,), jnp.float32),
            "wv": nrm(next(keys), (H, H)), "bv": jnp.zeros((H,), jnp.float32),
            "wo": nrm(next(keys), (H, H)), "bo": jnp.zeros((H,), jnp.float32),
            "ln1_g": jnp.ones((H,), jnp.float32), "ln1_b": jnp.zeros((H,), jnp.float32),
            "wi": nrm(next(keys), (H, I)), "bi": jnp.zeros((I,), jnp.float32),
            "wf": nrm(next(keys), (I, H)), "bf": jnp.zeros((H,), jnp.float32),
            "ln2_g": jnp.ones((H,), jnp.float32), "ln2_b": jnp.zeros((H,), jnp.float32),
        })
    return params


def fuse_params(params, cfg):
    """One-time prep: stack per-layer weights, fuse QKV (with the attention
    scale folded into the Q rows), cast matmul weights to bf16, pre-reshape
    biases / LN params (all hoisted out of the layer loop)."""
    H = cfg["hidden"]
    nh = cfg["heads"]
    dh = H // nh
    scale = 1.0 / float(dh) ** 0.5

    def stack(name):
        return jnp.stack([lyr[name] for lyr in params["layers"]], axis=0)

    wqkv = jnp.concatenate([stack("wq"), stack("wk"), stack("wv")], axis=-1)  # (L,H,3H)
    bqkv = jnp.concatenate([stack("bq"), stack("bk"), stack("bv")], axis=-1)  # (L,3H)
    wqkv_t = jnp.swapaxes(wqkv, 1, 2)                                         # (L,3H,H)
    # Fold 1/sqrt(dh) into the Q rows (weights + bias): the kernel's score
    # matmul then needs no per-tile VPU multiply (strictly free host-side prep).
    wqkv_t = wqkv_t.at[:, :H, :].multiply(scale)
    bqkv = bqkv.at[:, :H].multiply(scale)

    return {
        "word_emb": params["word_emb"],
        "pos_emb": params["pos_emb"],
        "type_emb": params["type_emb"],
        "emb_ln_g": params["emb_ln_g"].reshape(1, H),
        "emb_ln_b": params["emb_ln_b"].reshape(1, H),
        # QKV fused + pre-transposed so the in-kernel matmul output keeps heads
        # on the sublane axis (8-aligned head slices, no in-kernel transposes).
        "wqkv_t": wqkv_t.astype(jnp.bfloat16),                     # (L, 3H, H)
        "bqkv_t": bqkv[:, :, None],                                # (L, 3H, 1)
        "wo": stack("wo").astype(jnp.bfloat16),                    # (L, H, H)
        "bo": stack("bo")[:, None, :],
        "ln1_g": stack("ln1_g")[:, None, :],
        "ln1_b": stack("ln1_b")[:, None, :],
        "wi": stack("wi").astype(jnp.bfloat16),                    # (L, H, I)
        "bi": stack("bi")[:, None, :],
        "wf": stack("wf").astype(jnp.bfloat16),                    # (L, I, H)
        "bf": stack("bf")[:, None, :],
        "ln2_g": stack("ln2_g")[:, None, :],
        "ln2_b": stack("ln2_b")[:, None, :],
        "w_out": params["w_out"],
        "b_out": params["b_out"],
    }


# ---------------------------------------------------------------------------
# Forward pass (matches BERTBaseUncased.forward semantics)
# ---------------------------------------------------------------------------

def bert_base_uncased_forward(fp, ids, mask, token_type_ids, cfg):
    B, S = ids.shape

    # Embedding table gathers stay in plain JAX (data-dependent gather).
    pos = jnp.arange(S)
    x_emb = (fp["word_emb"][ids]
             + fp["pos_emb"][pos][None, :, :]
             + fp["type_emb"][token_type_ids])

    # Additive key-padding mask, (B, S), built once.
    addmask = (1.0 - mask.astype(jnp.float32)) * jnp.float32(-1e4)

    # Whole encoder (emb-LN + layers + mean/max pooling + cat) in one pallas_call.
    pooled = fused_encoder_pool(x_emb, addmask, fp, cfg)            # (B, 2H)

    # cat([mean, max], 1) -> Dropout(0.3) -> Linear(2H, 1)
    # TODO(synk): nn.Dropout(0.3) is identity at inference; training-mode drop not implemented.
    # Tiny (2H, 1) matvec finished in plain JAX so the kernel's output stays
    # lane-dense; fold into the kernel only at real scale.
    return jnp.dot(pooled, fp["w_out"]) + fp["b_out"]


# ---------------------------------------------------------------------------

if __name__ == "__main__":
    B, S = 2, 8
    key = jax.random.PRNGKey(0)
    k_ids, k_tt, k_par = jax.random.split(key, 3)

    ids = jax.random.randint(k_ids, (B, S), 0, CFG["vocab"], dtype=jnp.int32)
    mask = jnp.ones((B, S), dtype=jnp.int32).at[:, -2:].set(0)   # last 2 tokens padded
    token_type_ids = jax.random.randint(k_tt, (B, S), 0, CFG["type_vocab"], dtype=jnp.int32)

    params = init_params(k_par, CFG)
    fused = fuse_params(params, CFG)

    out = bert_base_uncased_forward(fused, ids, mask, token_type_ids, CFG)
    out = jax.block_until_ready(out)
    assert out.shape == (B, 1) and out.dtype == jnp.float32
    print("KERNEL_OK")
</pallas_src>

<mosaic_0001>
module attributes {stable_mosaic.version = 11 : i64} {
  func.func @_encoder_kernel(%arg0: i32, %arg1: i32, %arg2: memref<1x16x32xf32, #tpu.memory_space<vmem>>, %arg3: memref<1x16x16xf32, #tpu.memory_space<vmem>>, %arg4: memref<1x32xf32, #tpu.memory_space<vmem>>, %arg5: memref<1x32xf32, #tpu.memory_space<vmem>>, %arg6: memref<1x96x32xbf16, #tpu.memory_space<vmem>>, %arg7: memref<1x96x1xf32, #tpu.memory_space<vmem>>, %arg8: memref<1x32x32xbf16, #tpu.memory_space<vmem>>, %arg9: memref<1x1x32xf32, #tpu.memory_space<vmem>>, %arg10: memref<1x1x32xf32, #tpu.memory_space<vmem>>, %arg11: memref<1x1x32xf32, #tpu.memory_space<vmem>>, %arg12: memref<1x32x64xbf16, #tpu.memory_space<vmem>>, %arg13: memref<1x1x64xf32, #tpu.memory_space<vmem>>, %arg14: memref<1x64x32xbf16, #tpu.memory_space<vmem>>, %arg15: memref<1x1x32xf32, #tpu.memory_space<vmem>>, %arg16: memref<1x1x32xf32, #tpu.memory_space<vmem>>, %arg17: memref<1x1x32xf32, #tpu.memory_space<vmem>>, %arg18: memref<1x2x64xf32, #tpu.memory_space<vmem>>, %arg19: memref<16x32xf32, #tpu.memory_space<vmem>>) attributes {dimension_semantics = [#tpu.dimension_semantics<parallel>, #tpu.dimension_semantics<arbitrary>], iteration_bounds = array<i64: 1, 2>, scalar_prefetch = 0 : i64, scratch_operands = 1 : i64, tpu.core_type = #tpu.core_type<tc>, window_params = [{transform_indices = @transform_0, window_bounds = array<i64: 1, 16, 32>}, {transform_indices = @transform_1, window_bounds = array<i64: 1, 16, 16>}, {pipeline_mode = #tpu.pipeline_mode<synchronous>, transform_indices = @transform_2, window_bounds = array<i64: 1, 32>}, {pipeline_mode = #tpu.pipeline_mode<synchronous>, transform_indices = @transform_3, window_bounds = array<i64: 1, 32>}, {transform_indices = @transform_4, window_bounds = array<i64: 1, 96, 32>}, {transform_indices = @transform_5, window_bounds = array<i64: 1, 96, 1>}, {transform_indices = @transform_6, window_bounds = array<i64: 1, 32, 32>}, {transform_indices = @transform_7, window_bounds = array<i64: 1, 1, 32>}, {transform_indices = @transform_8, window_bounds = array<i64: 1, 1, 32>}, {transform_indices = @transform_9, window_bounds = array<i64: 1, 1, 32>}, {transform_indices = @transform_10, window_bounds = array<i64: 1, 32, 64>}, {transform_indices = @transform_11, window_bounds = array<i64: 1, 1, 64>}, {transform_indices = @transform_12, window_bounds = array<i64: 1, 64, 32>}, {transform_indices = @transform_13, window_bounds = array<i64: 1, 1, 32>}, {transform_indices = @transform_14, window_bounds = array<i64: 1, 1, 32>}, {transform_indices = @transform_15, window_bounds = array<i64: 1, 1, 32>}, {transform_indices = @transform_16, window_bounds = array<i64: 1, 2, 64>}]} {
    %c0_i32 = arith.constant 0 : i32
    %0 = arith.cmpi eq, %arg1, %c0_i32 : i32
    %1 = arith.extui %0 : i1 to i32
    %c0_i32_0 = arith.constant 0 : i32
    %2 = arith.cmpi ne, %1, %c0_i32_0 : i32
    scf.if %2 {
      %c0_77 = arith.constant 0 : index
      %c0_78 = arith.constant 0 : index
      %c0_79 = arith.constant 0 : index
      %190 = vector.load %arg2[%c0_77, %c0_78, %c0_79] : memref<1x16x32xf32, #tpu.memory_space<vmem>>, vector<1x16x32xf32>
      %191 = vector.shape_cast %190 : vector<1x16x32xf32> to vector<16x32xf32>
      %c0_80 = arith.constant 0 : index
      %c0_81 = arith.constant 0 : index
      %192 = vector.load %arg4[%c0_80, %c0_81] : memref<1x32xf32, #tpu.memory_space<vmem>>, vector<1x32xf32>
      %c0_82 = arith.constant 0 : index
      %c0_83 = arith.constant 0 : index
      %193 = vector.load %arg5[%c0_82, %c0_83] : memref<1x32xf32, #tpu.memory_space<vmem>>, vector<1x32xf32>
      %cst_84 = arith.constant dense<0.000000e+00> : vector<16xf32>
      %194 = vector.multi_reduction <add>, %191, %cst_84 [1] : vector<16x32xf32> to vector<16xf32>
      %195 = vector.shape_cast %194 : vector<16xf32> to vector<16x1xf32>
      %cst_85 = arith.constant 3.200000e+01 : f32
      %196 = vector.broadcast %cst_85 : f32 to vector<16x1xf32>
      %197 = arith.divf %195, %196 : vector<16x1xf32>
      %198 = vector.broadcast %197 : vector<16x1xf32> to vector<16x32xf32>
      %199 = arith.subf %191, %198 : vector<16x32xf32>
      %200 = arith.mulf %199, %199 : vector<16x32xf32>
      %cst_86 = arith.constant dense<0.000000e+00> : vector<16xf32>
      %201 = vector.multi_reduction <add>, %200, %cst_86 [1] : vector<16x32xf32> to vector<16xf32>
      %202 = vector.shape_cast %201 : vector<16xf32> to vector<16x1xf32>
      %cst_87 = arith.constant 3.200000e+01 : f32
      %203 = vector.broadcast %cst_87 : f32 to vector<16x1xf32>
      %204 = arith.divf %202, %203 : vector<16x1xf32>
      %205 = vector.broadcast %197 : vector<16x1xf32> to vector<16x32xf32>
      %206 = arith.subf %191, %205 : vector<16x32xf32>
      %cst_88 = arith.constant 9.99999996E-13 : f32
      %207 = vector.broadcast %cst_88 : f32 to vector<16x1xf32>
      %208 = arith.addf %204, %207 : vector<16x1xf32>
      %209 = math.rsqrt %208 : vector<16x1xf32>
      %210 = vector.broadcast %209 : vector<16x1xf32> to vector<16x32xf32>
      %211 = arith.mulf %206, %210 : vector<16x32xf32>
      %212 = vector.broadcast %192 : vector<1x32xf32> to vector<16x32xf32>
      %213 = arith.mulf %211, %212 : vector<16x32xf32>
      %214 = vector.broadcast %193 : vector<1x32xf32> to vector<16x32xf32>
      %215 = arith.addf %213, %214 : vector<16x32xf32>
      %c0_89 = arith.constant 0 : index
      %c0_90 = arith.constant 0 : index
      %216 = vector.load %arg19[%c0_89, %c0_90] : memref<16x32xf32, #tpu.memory_space<vmem>>, vector<16x32xf32>
      tpu.vector_store %arg19[%c0_89, %c0_90], %215 {strides = array<i32>} : memref<16x32xf32, #tpu.memory_space<vmem>>, vector<16x32xf32>,
    } else {
    }
    %c0 = arith.constant 0 : index
    %c0_1 = arith.constant 0 : index
    %3 = vector.load %arg19[%c0, %c0_1] : memref<16x32xf32, #tpu.memory_space<vmem>>, vector<16x32xf32>
    %c0_2 = arith.constant 0 : index
    %c0_3 = arith.constant 0 : index
    %c0_4 = arith.constant 0 : index
    %4 = vector.load %arg3[%c0_2, %c0_3, %c0_4] : memref<1x16x16xf32, #tpu.memory_space<vmem>>, vector<1x16x16xf32>
    %5 = vector.shape_cast %4 : vector<1x16x16xf32> to vector<16x16xf32>
    %c0_5 = arith.constant 0 : index
    %c0_6 = arith.constant 0 : index
    %c0_7 = arith.constant 0 : index
    %6 = vector.load %arg6[%c0_5, %c0_6, %c0_7] : memref<1x96x32xbf16, #tpu.memory_space<vmem>>, vector<1x96x32xbf16>
    %7 = vector.shape_cast %6 : vector<1x96x32xbf16> to vector<96x32xbf16>
    %8 = arith.truncf %3 : vector<16x32xf32> to vector<16x32xbf16>
    %cst = arith.constant dense<0.000000e+00> : vector<96x16xf32>
    %9 = tpu.matmul %7, %8, %cst {dimension_numbers = #tpu.dot_dimension_numbers<[1], [1], [0], [0], [0, 0, 1, 0], [], []>} : vector<96x32xbf16>, vector<16x32xbf16>, vector<96x16xf32> -> vector<96x16xf32>
    %c0_8 = arith.constant 0 : index
    %c0_9 = arith.constant 0 : index
    %c0_10 = arith.constant 0 : index
    %10 = vector.load %arg7[%c0_8, %c0_9, %c0_10] : memref<1x96x1xf32, #tpu.memory_space<vmem>>, vector<1x96x1xf32>
    %11 = vector.shape_cast %10 : vector<1x96x1xf32> to vector<96x1xf32>
    %12 = vector.broadcast %11 : vector<96x1xf32> to vector<96x16xf32>
    %13 = arith.addf %9, %12 : vector<96x16xf32>
    %14 = vector.extract_strided_slice %13 {offsets = [0, 0], sizes = [8, 16], strides = [1, 1]} : vector<96x16xf32> to vector<8x16xf32>
    %15 = arith.truncf %14 : vector<8x16xf32> to vector<8x16xbf16>
    %16 = vector.extract_strided_slice %13 {offsets = [32, 0], sizes = [8, 16], strides = [1, 1]} : vector<96x16xf32> to vector<8x16xf32>
    %17 = arith.truncf %16 : vector<8x16xf32> to vector<8x16xbf16>
    %18 = vector.extract_strided_slice %13 {offsets = [64, 0], sizes = [8, 16], strides = [1, 1]} : vector<96x16xf32> to vector<8x16xf32>
    %19 = arith.truncf %18 : vector<8x16xf32> to vector<8x16xbf16>
    %cst_11 = arith.constant dense<0.000000e+00> : vector<16x16xf32>
    %20 = tpu.matmul %15, %17, %cst_11 {dimension_numbers = #tpu.dot_dimension_numbers<[0], [0], [1], [1], [0, 1, 1, 1], [], []>} : vector<8x16xbf16>, vector<8x16xbf16>, vector<16x16xf32> -> vector<16x16xf32>
    %21 = arith.addf %20, %5 : vector<16x16xf32>
    %cst_12 = arith.constant dense<0xFF800000> : vector<16xf32>
    %22 = vector.multi_reduction <maximumf>, %21, %cst_12 [1] : vector<16x16xf32> to vector<16xf32>
    %23 = vector.shape_cast %22 : vector<16xf32> to vector<16x1xf32>
    %24 = vector.broadcast %23 : vector<16x1xf32> to vector<16x16xf32>
    %25 = arith.subf %21, %24 : vector<16x16xf32>
    %26 = math.exp %25 : vector<16x16xf32>
    %cst_13 = arith.constant dense<0.000000e+00> : vector<16xf32>
    %27 = vector.multi_reduction <add>, %26, %cst_13 [1] : vector<16x16xf32> to vector<16xf32>
    %28 = vector.shape_cast %27 : vector<16xf32> to vector<16x1xf32>
    %29 = tpu.reciprocal %28 {approx = true} : vector<16x1xf32> -> vector<16x1xf32>
    %30 = vector.broadcast %29 : vector<16x1xf32> to vector<16x16xf32>
    %31 = arith.mulf %26, %30 : vector<16x16xf32>
    %32 = arith.truncf %31 : vector<16x16xf32> to vector<16x16xbf16>
    %cst_14 = arith.constant dense<0.000000e+00> : vector<8x16xf32>
    %33 = tpu.matmul %19, %32, %cst_14 {dimension_numbers = #tpu.dot_dimension_numbers<[1], [1], [0], [0], [0, 0, 1, 0], [], []>} : vector<8x16xbf16>, vector<16x16xbf16>, vector<8x16xf32> -> vector<8x16xf32>
    %34 = vector.extract_strided_slice %13 {offsets = [8, 0], sizes = [8, 16], strides = [1, 1]} : vector<96x16xf32> to vector<8x16xf32>
    %35 = arith.truncf %34 : vector<8x16xf32> to vector<8x16xbf16>
    %36 = vector.extract_strided_slice %13 {offsets = [40, 0], sizes = [8, 16], strides = [1, 1]} : vector<96x16xf32> to vector<8x16xf32>
    %37 = arith.truncf %36 : vector<8x16xf32> to vector<8x16xbf16>
    %38 = vector.extract_strided_slice %13 {offsets = [72, 0], sizes = [8, 16], strides = [1, 1]} : vector<96x16xf32> to vector<8x16xf32>
    %39 = arith.truncf %38 : vector<8x16xf32> to vector<8x16xbf16>
    %cst_15 = arith.constant dense<0.000000e+00> : vector<16x16xf32>
    %40 = tpu.matmul %35, %37, %cst_15 {dimension_numbers = #tpu.dot_dimension_numbers<[0], [0], [1], [1], [0, 1, 1, 1], [], []>} : vector<8x16xbf16>, vector<8x16xbf16>, vector<16x16xf32> -> vector<16x16xf32>
    %41 = arith.addf %40, %5 : vector<16x16xf32>
    %cst_16 = arith.constant dense<0xFF800000> : vector<16xf32>
    %42 = vector.multi_reduction <maximumf>, %41, %cst_16 [1] : vector<16x16xf32> to vector<16xf32>
    %43 = vector.shape_cast %42 : vector<16xf32> to vector<16x1xf32>
    %44 = vector.broadcast %43 : vector<16x1xf32> to vector<16x16xf32>
    %45 = arith.subf %41, %44 : vector<16x16xf32>
    %46 = math.exp %45 : vector<16x16xf32>
    %cst_17 = arith.constant dense<0.000000e+00> : vector<16xf32>
    %47 = vector.multi_reduction <add>, %46, %cst_17 [1] : vector<16x16xf32> to vector<16xf32>
    %48 = vector.shape_cast %47 : vector<16xf32> to vector<16x1xf32>
    %49 = tpu.reciprocal %48 {approx = true} : vector<16x1xf32> -> vector<16x1xf32>
    %50 = vector.broadcast %49 : vector<16x1xf32> to vector<16x16xf32>
    %51 = arith.mulf %46, %50 : vector<16x16xf32>
    %52 = arith.truncf %51 : vector<16x16xf32> to vector<16x16xbf16>
    %cst_18 = arith.constant dense<0.000000e+00> : vector<8x16xf32>
    %53 = tpu.matmul %39, %52, %cst_18 {dimension_numbers = #tpu.dot_dimension_numbers<[1], [1], [0], [0], [0, 0, 1, 0], [], []>} : vector<8x16xbf16>, vector<16x16xbf16>, vector<8x16xf32> -> vector<8x16xf32>
    %54 = vector.extract_strided_slice %13 {offsets = [16, 0], sizes = [8, 16], strides = [1, 1]} : vector<96x16xf32> to vector<8x16xf32>
    %55 = arith.truncf %54 : vector<8x16xf32> to vector<8x16xbf16>
    %56 = vector.extract_strided_slice %13 {offsets = [48, 0], sizes = [8, 16], strides = [1, 1]} : vector<96x16xf32> to vector<8x16xf32>
    %57 = arith.truncf %56 : vector<8x16xf32> to vector<8x16xbf16>
    %58 = vector.extract_strided_slice %13 {offsets = [80, 0], sizes = [8, 16], strides = [1, 1]} : vector<96x16xf32> to vector<8x16xf32>
    %59 = arith.truncf %58 : vector<8x16xf32> to vector<8x16xbf16>
    %cst_19 = arith.constant dense<0.000000e+00> : vector<16x16xf32>
    %60 = tpu.matmul %55, %57, %cst_19 {dimension_numbers = #tpu.dot_dimension_numbers<[0], [0], [1], [1], [0, 1, 1, 1], [], []>} : vector<8x16xbf16>, vector<8x16xbf16>, vector<16x16xf32> -> vector<16x16xf32>
    %61 = arith.addf %60, %5 : vector<16x16xf32>
    %cst_20 = arith.constant dense<0xFF800000> : vector<16xf32>
    %62 = vector.multi_reduction <maximumf>, %61, %cst_20 [1] : vector<16x16xf32> to vector<16xf32>
    %63 = vector.shape_cast %62 : vector<16xf32> to vector<16x1xf32>
    %64 = vector.broadcast %63 : vector<16x1xf32> to vector<16x16xf32>
    %65 = arith.subf %61, %64 : vector<16x16xf32>
    %66 = math.exp %65 : vector<16x16xf32>
    %cst_21 = arith.constant dense<0.000000e+00> : vector<16xf32>
    %67 = vector.multi_reduction <add>, %66, %cst_21 [1] : vector<16x16xf32> to vector<16xf32>
    %68 = vector.shape_cast %67 : vector<16xf32> to vector<16x1xf32>
    %69 = tpu.reciprocal %68 {approx = true} : vector<16x1xf32> -> vector<16x1xf32>
    %70 = vector.broadcast %69 : vector<16x1xf32> to vector<16x16xf32>
    %71 = arith.mulf %66, %70 : vector<16x16xf32>
    %72 = arith.truncf %71 : vector<16x16xf32> to vector<16x16xbf16>
    %cst_22 = arith.constant dense<0.000000e+00> : vector<8x16xf32>
    %73 = tpu.matmul %59, %72, %cst_22 {dimension_numbers = #tpu.dot_dimension_numbers<[1], [1], [0], [0], [0, 0, 1, 0], [], []>} : vector<8x16xbf16>, vector<16x16xbf16>, vector<8x16xf32> -> vector<8x16xf32>
    %74 = vector.extract_strided_slice %13 {offsets = [24, 0], sizes = [8, 16], strides = [1, 1]} : vector<96x16xf32> to vector<8x16xf32>
    %75 = arith.truncf %74 : vector<8x16xf32> to vector<8x16xbf16>
    %76 = vector.extract_strided_slice %13 {offsets = [56, 0], sizes = [8, 16], strides = [1, 1]} : vector<96x16xf32> to vector<8x16xf32>
    %77 = arith.truncf %76 : vector<8x16xf32> to vector<8x16xbf16>
    %78 = vector.extract_strided_slice %13 {offsets = [88, 0], sizes = [8, 16], strides = [1, 1]} : vector<96x16xf32> to vector<8x16xf32>
    %79 = arith.truncf %78 : vector<8x16xf32> to vector<8x16xbf16>
    %cst_23 = arith.constant dense<0.000000e+00> : vector<16x16xf32>
    %80 = tpu.matmul %75, %77, %cst_23 {dimension_numbers = #tpu.dot_dimension_numbers<[0], [0], [1], [1], [0, 1, 1, 1], [], []>} : vector<8x16xbf16>, vector<8x16xbf16>, vector<16x16xf32> -> vector<16x16xf32>
    %81 = arith.addf %80, %5 : vector<16x16xf32>
    %cst_24 = arith.constant dense<0xFF800000> : vector<16xf32>
    %82 = vector.multi_reduction <maximumf>, %81, %cst_24 [1] : vector<16x16xf32> to vector<16xf32>
    %83 = vector.shape_cast %82 : vector<16xf32> to vector<16x1xf32>
    %84 = vector.broadcast %83 : vector<16x1xf32> to vector<16x16xf32>
    %85 = arith.subf %81, %84 : vector<16x16xf32>
    %86 = math.exp %85 : vector<16x16xf32>
    %cst_25 = arith.constant dense<0.000000e+00> : vector<16xf32>
    %87 = vector.multi_reduction <add>, %86, %cst_25 [1] : vector<16x16xf32> to vector<16xf32>
    %88 = vector.shape_cast %87 : vector<16xf32> to vector<16x1xf32>
    %89 = tpu.reciprocal %88 {approx = true} : vector<16x1xf32> -> vector<16x1xf32>
    %90 = vector.broadcast %89 : vector<16x1xf32> to vector<16x16xf32>
    %91 = arith.mulf %86, %90 : vector<16x16xf32>
    %92 = arith.truncf %91 : vector<16x16xf32> to vector<16x16xbf16>
    %cst_26 = arith.constant dense<0.000000e+00> : vector<8x16xf32>
    %93 = tpu.matmul %79, %92, %cst_26 {dimension_numbers = #tpu.dot_dimension_numbers<[1], [1], [0], [0], [0, 0, 1, 0], [], []>} : vector<8x16xbf16>, vector<16x16xbf16>, vector<8x16xf32> -> vector<8x16xf32>
    %94 = tpu.concatenate %33, %53, %73, %93 in 0 : vector<8x16xf32>, vector<8x16xf32>, vector<8x16xf32>, vector<8x16xf32> -> vector<32x16xf32>
    %95 = arith.truncf %94 : vector<32x16xf32> to vector<32x16xbf16>
    %c0_27 = arith.constant 0 : index
    %c0_28 = arith.constant 0 : index
    %c0_29 = arith.constant 0 : index
    %96 = vector.load %arg8[%c0_27, %c0_28, %c0_29] : memref<1x32x32xbf16, #tpu.memory_space<vmem>>, vector<1x32x32xbf16>
    %97 = vector.shape_cast %96 : vector<1x32x32xbf16> to vector<32x32xbf16>
    %cst_30 = arith.constant dense<0.000000e+00> : vector<16x32xf32>
    %98 = tpu.matmul %95, %97, %cst_30 {dimension_numbers = #tpu.dot_dimension_numbers<[0], [0], [1], [1], [0, 1, 1, 1], [], []>} : vector<32x16xbf16>, vector<32x32xbf16>, vector<16x32xf32> -> vector<16x32xf32>
    %c0_31 = arith.constant 0 : index
    %c0_32 = arith.constant 0 : index
    %c0_33 = arith.constant 0 : index
    %99 = vector.load %arg9[%c0_31, %c0_32, %c0_33] : memref<1x1x32xf32, #tpu.memory_space<vmem>>, vector<1x1x32xf32>
    %100 = vector.shape_cast %99 : vector<1x1x32xf32> to vector<1x32xf32>
    %101 = vector.broadcast %100 : vector<1x32xf32> to vector<16x32xf32>
    %102 = arith.addf %98, %101 : vector<16x32xf32>
    %103 = arith.addf %3, %102 : vector<16x32xf32>
    %c0_34 = arith.constant 0 : index
    %c0_35 = arith.constant 0 : index
    %c0_36 = arith.constant 0 : index
    %104 = vector.load %arg10[%c0_34, %c0_35, %c0_36] : memref<1x1x32xf32, #tpu.memory_space<vmem>>, vector<1x1x32xf32>
    %105 = vector.shape_cast %104 : vector<1x1x32xf32> to vector<1x32xf32>
    %c0_37 = arith.constant 0 : index
    %c0_38 = arith.constant 0 : index
    %c0_39 = arith.constant 0 : index
    %106 = vector.load %arg11[%c0_37, %c0_38, %c0_39] : memref<1x1x32xf32, #tpu.memory_space<vmem>>, vector<1x1x32xf32>
    %107 = vector.shape_cast %106 : vector<1x1x32xf32> to vector<1x32xf32>
    %cst_40 = arith.constant dense<0.000000e+00> : vector<16xf32>
    %108 = vector.multi_reduction <add>, %103, %cst_40 [1] : vector<16x32xf32> to vector<16xf32>
    %109 = vector.shape_cast %108 : vector<16xf32> to vector<16x1xf32>
    %cst_41 = arith.constant 3.200000e+01 : f32
    %110 = vector.broadcast %cst_41 : f32 to vector<16x1xf32>
    %111 = arith.divf %109, %110 : vector<16x1xf32>
    %112 = vector.broadcast %111 : vector<16x1xf32> to vector<16x32xf32>
    %113 = arith.subf %103, %112 : vector<16x32xf32>
    %114 = arith.mulf %113, %113 : vector<16x32xf32>
    %cst_42 = arith.constant dense<0.000000e+00> : vector<16xf32>
    %115 = vector.multi_reduction <add>, %114, %cst_42 [1] : vector<16x32xf32> to vector<16xf32>
    %116 = vector.shape_cast %115 : vector<16xf32> to vector<16x1xf32>
    %cst_43 = arith.constant 3.200000e+01 : f32
    %117 = vector.broadcast %cst_43 : f32 to vector<16x1xf32>
    %118 = arith.divf %116, %117 : vector<16x1xf32>
    %119 = vector.broadcast %111 : vector<16x1xf32> to vector<16x32xf32>
    %120 = arith.subf %103, %119 : vector<16x32xf32>
    %cst_44 = arith.constant 9.99999996E-13 : f32
    %121 = vector.broadcast %cst_44 : f32 to vector<16x1xf32>
    %122 = arith.addf %118, %121 : vector<16x1xf32>
    %123 = math.rsqrt %122 : vector<16x1xf32>
    %124 = vector.broadcast %123 : vector<16x1xf32> to vector<16x32xf32>
    %125 = arith.mulf %120, %124 : vector<16x32xf32>
    %126 = vector.broadcast %105 : vector<1x32xf32> to vector<16x32xf32>
    %127 = arith.mulf %125, %126 : vector<16x32xf32>
    %128 = vector.broadcast %107 : vector<1x32xf32> to vector<16x32xf32>
    %129 = arith.addf %127, %128 : vector<16x32xf32>
    %130 = arith.truncf %129 : vector<16x32xf32> to vector<16x32xbf16>
    %c0_45 = arith.constant 0 : index
    %c0_46 = arith.constant 0 : index
    %c0_47 = arith.constant 0 : index
    %131 = vector.load %arg12[%c0_45, %c0_46, %c0_47] : memref<1x32x64xbf16, #tpu.memory_space<vmem>>, vector<1x32x64xbf16>
    %132 = vector.shape_cast %131 : vector<1x32x64xbf16> to vector<32x64xbf16>
    %cst_48 = arith.constant dense<0.000000e+00> : vector<16x64xf32>
    %133 = tpu.matmul %130, %132, %cst_48 {dimension_numbers = #tpu.dot_dimension_numbers<[1], [0], [0], [1], [0, 0, 1, 1], [], []>} : vector<16x32xbf16>, vector<32x64xbf16>, vector<16x64xf32> -> vector<16x64xf32>
    %c0_49 = arith.constant 0 : index
    %c0_50 = arith.constant 0 : index
    %c0_51 = arith.constant 0 : index
    %134 = vector.load %arg13[%c0_49, %c0_50, %c0_51] : memref<1x1x64xf32, #tpu.memory_space<vmem>>, vector<1x1x64xf32>
    %135 = vector.shape_cast %134 : vector<1x1x64xf32> to vector<1x64xf32>
    %136 = vector.broadcast %135 : vector<1x64xf32> to vector<16x64xf32>
    %137 = arith.addf %133, %136 : vector<16x64xf32>
    %cst_52 = arith.constant 5.000000e-01 : f32
    %138 = vector.broadcast %cst_52 : f32 to vector<16x64xf32>
    %139 = arith.mulf %138, %137 : vector<16x64xf32>
    %cst_53 = arith.constant 4.471500e-02 : f32
    %140 = vector.broadcast %cst_53 : f32 to vector<16x64xf32>
    %141 = arith.mulf %140, %137 : vector<16x64xf32>
    %142 = arith.mulf %141, %137 : vector<16x64xf32>
    %143 = arith.mulf %142, %137 : vector<16x64xf32>
    %144 = arith.addf %137, %143 : vector<16x64xf32>
    %cst_54 = arith.constant 0.797884583 : f32
    %145 = vector.broadcast %cst_54 : f32 to vector<16x64xf32>
    %146 = arith.mulf %145, %144 : vector<16x64xf32>
    %147 = math.tanh %146 : vector<16x64xf32>
    %cst_55 = arith.constant 1.000000e+00 : f32
    %148 = vector.broadcast %cst_55 : f32 to vector<16x64xf32>
    %149 = arith.addf %148, %147 : vector<16x64xf32>
    %150 = arith.mulf %139, %149 : vector<16x64xf32>
    %151 = arith.truncf %150 : vector<16x64xf32> to vector<16x64xbf16>
    %c0_56 = arith.constant 0 : index
    %c0_57 = arith.constant 0 : index
    %c0_58 = arith.constant 0 : index
    %152 = vector.load %arg14[%c0_56, %c0_57, %c0_58] : memref<1x64x32xbf16, #tpu.memory_space<vmem>>, vector<1x64x32xbf16>
    %153 = vector.shape_cast %152 : vector<1x64x32xbf16> to vector<64x32xbf16>
    %cst_59 = arith.constant dense<0.000000e+00> : vector<16x32xf32>
    %154 = tpu.matmul %151, %153, %cst_59 {dimension_numbers = #tpu.dot_dimension_numbers<[1], [0], [0], [1], [0, 0, 1, 1], [], []>} : vector<16x64xbf16>, vector<64x32xbf16>, vector<16x32xf32> -> vector<16x32xf32>
    %c0_60 = arith.constant 0 : index
    %c0_61 = arith.constant 0 : index
    %c0_62 = arith.constant 0 : index
    %155 = vector.load %arg15[%c0_60, %c0_61, %c0_62] : memref<1x1x32xf32, #tpu.memory_space<vmem>>, vector<1x1x32xf32>
    %156 = vector.shape_cast %155 : vector<1x1x32xf32> to vector<1x32xf32>
    %157 = vector.broadcast %156 : vector<1x32xf32> to vector<16x32xf32>
    %158 = arith.addf %154, %157 : vector<16x32xf32>
    %159 = arith.addf %129, %158 : vector<16x32xf32>
    %c0_63 = arith.constant 0 : index
    %c0_64 = arith.constant 0 : index
    %c0_65 = arith.constant 0 : index
    %160 = vector.load %arg16[%c0_63, %c0_64, %c0_65] : memref<1x1x32xf32, #tpu.memory_space<vmem>>, vector<1x1x32xf32>
    %161 = vector.shape_cast %160 : vector<1x1x32xf32> to vector<1x32xf32>
    %c0_66 = arith.constant 0 : index
    %c0_67 = arith.constant 0 : index
    %c0_68 = arith.constant 0 : index
    %162 = vector.load %arg17[%c0_66, %c0_67, %c0_68] : memref<1x1x32xf32, #tpu.memory_space<vmem>>, vector<1x1x32xf32>
    %163 = vector.shape_cast %162 : vector<1x1x32xf32> to vector<1x32xf32>
    %cst_69 = arith.constant dense<0.000000e+00> : vector<16xf32>
    %164 = vector.multi_reduction <add>, %159, %cst_69 [1] : vector<16x32xf32> to vector<16xf32>
    %165 = vector.shape_cast %164 : vector<16xf32> to vector<16x1xf32>
    %cst_70 = arith.constant 3.200000e+01 : f32
    %166 = vector.broadcast %cst_70 : f32 to vector<16x1xf32>
    %167 = arith.divf %165, %166 : vector<16x1xf32>
    %168 = vector.broadcast %167 : vector<16x1xf32> to vector<16x32xf32>
    %169 = arith.subf %159, %168 : vector<16x32xf32>
    %170 = arith.mulf %169, %169 : vector<16x32xf32>
    %cst_71 = arith.constant dense<0.000000e+00> : vector<16xf32>
    %171 = vector.multi_reduction <add>, %170, %cst_71 [1] : vector<16x32xf32> to vector<16xf32>
    %172 = vector.shape_cast %171 : vector<16xf32> to vector<16x1xf32>
    %cst_72 = arith.constant 3.200000e+01 : f32
    %173 = vector.broadcast %cst_72 : f32 to vector<16x1xf32>
    %174 = arith.divf %172, %173 : vector<16x1xf32>
    %175 = vector.broadcast %167 : vector<16x1xf32> to vector<16x32xf32>
    %176 = arith.subf %159, %175 : vector<16x32xf32>
    %cst_73 = arith.constant 9.99999996E-13 : f32
    %177 = vector.broadcast %cst_73 : f32 to vector<16x1xf32>
    %178 = arith.addf %174, %177 : vector<16x1xf32>
    %179 = math.rsqrt %178 : vector<16x1xf32>
    %180 = vector.broadcast %179 : vector<16x1xf32> to vector<16x32xf32>
    %181 = arith.mulf %176, %180 : vector<16x32xf32>
    %182 = vector.broadcast %161 : vector<1x32xf32> to vector<16x32xf32>
    %183 = arith.mulf %181, %182 : vector<16x32xf32>
    %184 = vector.broadcast %163 : vector<1x32xf32> to vector<16x32xf32>
    %185 = arith.addf %183, %184 : vector<16x32xf32>
    %c0_74 = arith.constant 0 : index
    %c0_75 = arith.constant 0 : index
    %186 = vector.load %arg19[%c0_74, %c0_75] : memref<16x32xf32, #tpu.memory_space<vmem>>, vector<16x32xf32>
    tpu.vector_store %arg19[%c0_74, %c0_75], %185 {strides = array<i32>} : memref<16x32xf32, #tpu.memory_space<vmem>>, vector<16x32xf32>,
    %c1_i32 = arith.constant 1 : i32
    %187 = arith.cmpi eq, %arg1, %c1_i32 : i32
    %188 = arith.extui %187 : i1 to i32
    %c0_i32_76 = arith.constant 0 : i32
    %189 = arith.cmpi ne, %188, %c0_i32_76 : i32
    scf.if %189 {
      %190 = vector.extract_strided_slice %185 {offsets = [0, 0], sizes = [8, 32], strides = [1, 1]} : vector<16x32xf32> to vector<8x32xf32>
      %cst_77 = arith.constant dense<0.000000e+00> : vector<32xf32>
      %191 = vector.multi_reduction <add>, %190, %cst_77 [0] : vector<8x32xf32> to vector<32xf32>
      %192 = vector.shape_cast %191 : vector<32xf32> to vector<1x32xf32>
      %cst_78 = arith.constant 8.000000e+00 : f32
      %193 = vector.broadcast %cst_78 : f32 to vector<1x32xf32>
      %194 = arith.divf %192, %193 : vector<1x32xf32>
      %cst_79 = arith.constant dense<0xFF800000> : vector<32xf32>
      %195 = vector.multi_reduction <maximumf>, %190, %cst_79 [0] : vector<8x32xf32> to vector<32xf32>
      %196 = vector.shape_cast %195 : vector<32xf32> to vector<1x32xf32>
      %197 = tpu.concatenate %194, %196 in 1 : vector<1x32xf32>, vector<1x32xf32> -> vector<1x64xf32>
      %198 = vector.extract_strided_slice %185 {offsets = [8, 0], sizes = [8, 32], strides = [1, 1]} : vector<16x32xf32> to vector<8x32xf32>
      %cst_80 = arith.constant dense<0.000000e+00> : vector<32xf32>
      %199 = vector.multi_reduction <add>, %198, %cst_80 [0] : vector<8x32xf32> to vector<32xf32>
      %200 = vector.shape_cast %199 : vector<32xf32> to vector<1x32xf32>
      %cst_81 = arith.constant 8.000000e+00 : f32
      %201 = vector.broadcast %cst_81 : f32 to vector<1x32xf32>
      %202 = arith.divf %200, %201 : vector<1x32xf32>
      %cst_82 = arith.constant dense<0xFF800000> : vector<32xf32>
      %203 = vector.multi_reduction <maximumf>, %198, %cst_82 [0] : vector<8x32xf32> to vector<32xf32>
      %204 = vector.shape_cast %203 : vector<32xf32> to vector<1x32xf32>
      %205 = tpu.concatenate %202, %204 in 1 : vector<1x32xf32>, vector<1x32xf32> -> vector<1x64xf32>
      %206 = tpu.concatenate %197, %205 in 0 : vector<1x64xf32>, vector<1x64xf32> -> vector<2x64xf32>
      %c0_83 = arith.constant 0 : index
      %c0_84 = arith.constant 0 : index
      %c0_85 = arith.constant 0 : index
      %207 = vector.load %arg18[%c0_83, %c0_84, %c0_85] : memref<1x2x64xf32, #tpu.memory_space<vmem>>, vector<1x2x64xf32>
      %208 = vector.shape_cast %207 : vector<1x2x64xf32> to vector<2x64xf32>
      %209 = vector.shape_cast %206 : vector<2x64xf32> to vector<1x2x64xf32>
      tpu.vector_store %arg18[%c0_83, %c0_84, %c0_85], %209 {strides = array<i32>} : memref<1x2x64xf32, #tpu.memory_space<vmem>>, vector<1x2x64xf32>,
    } else {
    }
    return
  }
  func.func @transform_0(%arg0: i32, %arg1: i32) -> (i32, i32, i32) {
    %c0_i32 = arith.constant 0 : i32
    %c0_i32_0 = arith.constant 0 : i32
    %c0_i32_1 = arith.constant 0 : i32
    return %arg0, %c0_i32, %c0_i32_0 : i32, i32, i32
  }
  func.func @transform_1(%arg0: i32, %arg1: i32) -> (i32, i32, i32) {
    %c0_i32 = arith.constant 0 : i32
    %c0_i32_0 = arith.constant 0 : i32
    %c0_i32_1 = arith.constant 0 : i32
    return %arg0, %c0_i32, %c0_i32_0 : i32, i32, i32
  }
  func.func @transform_2(%arg0: i32, %arg1: i32) -> (i32, i32) {
    %c0_i32 = arith.constant 0 : i32
    %c0_i32_0 = arith.constant 0 : i32
    %c0_i32_1 = arith.constant 0 : i32
    return %c0_i32, %c0_i32_0 : i32, i32
  }
  func.func @transform_3(%arg0: i32, %arg1: i32) -> (i32, i32) {
    %c0_i32 = arith.constant 0 : i32
    %c0_i32_0 = arith.constant 0 : i32
    %c0_i32_1 = arith.constant 0 : i32
    return %c0_i32, %c0_i32_0 : i32, i32
  }
  func.func @transform_4(%arg0: i32, %arg1: i32) -> (i32, i32, i32) {
    %c0_i32 = arith.constant 0 : i32
    %c0_i32_0 = arith.constant 0 : i32
    %c0_i32_1 = arith.constant 0 : i32
    return %arg1, %c0_i32, %c0_i32_0 : i32, i32, i32
  }
  func.func @transform_5(%arg0: i32, %arg1: i32) -> (i32, i32, i32) {
    %c0_i32 = arith.constant 0 : i32
    %c0_i32_0 = arith.constant 0 : i32
    %c0_i32_1 = arith.constant 0 : i32
    return %arg1, %c0_i32, %c0_i32_0 : i32, i32, i32
  }
  func.func @transform_6(%arg0: i32, %arg1: i32) -> (i32, i32, i32) {
    %c0_i32 = arith.constant 0 : i32
    %c0_i32_0 = arith.constant 0 : i32
    %c0_i32_1 = arith.constant 0 : i32
    return %arg1, %c0_i32, %c0_i32_0 : i32, i32, i32
  }
  func.func @transform_7(%arg0: i32, %arg1: i32) -> (i32, i32, i32) {
    %c0_i32 = arith.constant 0 : i32
    %c0_i32_0 = arith.constant 0 : i32
    %c0_i32_1 = arith.constant 0 : i32
    return %arg1, %c0_i32, %c0_i32_0 : i32, i32, i32
  }
  func.func @transform_8(%arg0: i32, %arg1: i32) -> (i32, i32, i32) {
    %c0_i32 = arith.constant 0 : i32
    %c0_i32_0 = arith.constant 0 : i32
    %c0_i32_1 = arith.constant 0 : i32
    return %arg1, %c0_i32, %c0_i32_0 : i32, i32, i32
  }
  func.func @transform_9(%arg0: i32, %arg1: i32) -> (i32, i32, i32) {
    %c0_i32 = arith.constant 0 : i32
    %c0_i32_0 = arith.constant 0 : i32
    %c0_i32_1 = arith.constant 0 : i32
    return %arg1, %c0_i32, %c0_i32_0 : i32, i32, i32
  }
  func.func @transform_10(%arg0: i32, %arg1: i32) -> (i32, i32, i32) {
    %c0_i32 = arith.constant 0 : i32
    %c0_i32_0 = arith.constant 0 : i32
    %c0_i32_1 = arith.constant 0 : i32
    return %arg1, %c0_i32, %c0_i32_0 : i32, i32, i32
  }
  func.func @transform_11(%arg0: i32, %arg1: i32) -> (i32, i32, i32) {
    %c0_i32 = arith.constant 0 : i32
    %c0_i32_0 = arith.constant 0 : i32
    %c0_i32_1 = arith.constant 0 : i32
    return %arg1, %c0_i32, %c0_i32_0 : i32, i32, i32
  }
  func.func @transform_12(%arg0: i32, %arg1: i32) -> (i32, i32, i32) {
    %c0_i32 = arith.constant 0 : i32
    %c0_i32_0 = arith.constant 0 : i32
    %c0_i32_1 = arith.constant 0 : i32
    return %arg1, %c0_i32, %c0_i32_0 : i32, i32, i32
  }
  func.func @transform_13(%arg0: i32, %arg1: i32) -> (i32, i32, i32) {
    %c0_i32 = arith.constant 0 : i32
    %c0_i32_0 = arith.constant 0 : i32
    %c0_i32_1 = arith.constant 0 : i32
    return %arg1, %c0_i32, %c0_i32_0 : i32, i32, i32
  }
  func.func @transform_14(%arg0: i32, %arg1: i32) -> (i32, i32, i32) {
    %c0_i32 = arith.constant 0 : i32
    %c0_i32_0 = arith.constant 0 : i32
    %c0_i32_1 = arith.constant 0 : i32
    return %arg1, %c0_i32, %c0_i32_0 : i32, i32, i32
  }
  func.func @transform_15(%arg0: i32, %arg1: i32) -> (i32, i32, i32) {
    %c0_i32 = arith.constant 0 : i32
    %c0_i32_0 = arith.constant 0 : i32
    %c0_i32_1 = arith.constant 0 : i32
    return %arg1, %c0_i32, %c0_i32_0 : i32, i32, i32
  }
  func.func @transform_16(%arg0: i32, %arg1: i32) -> (i32, i32, i32) {
    %c0_i32 = arith.constant 0 : i32
    %c0_i32_0 = arith.constant 0 : i32
    %c0_i32_1 = arith.constant 0 : i32
    return %arg0, %c0_i32, %c0_i32_0 : i32, i32, i32
  }
}

</mosaic_0001>

<bundles_post_ra>
// kernel: tpu_custom_call.1
= control target key start
LH: loop header
LB: loop body
LE: loop exit
PB: predicated region body
PF: predicated region fallthrough
CT: control target
= control target key end

     0   :  { %s2948_s0 = inlined_call_operand.vmem [shape: f32[1,16,32], index: 0, kind: input, shape index: {}]   ;;  %s2949_s1 = inlined_call_operand.vmem [shape: f32[1,16,16], index: 1, kind: input, shape index: {}]   ;;  %s2950_s2 = inlined_call_operand.vmem [shape: f32[1,32], index: 2, kind: input, shape index: {}]   ;;  %s2951_s3 = inlined_call_operand.vmem [shape: f32[1,32], index: 3, kind: input, shape index: {}]   ;;  %s2952_s4 = inlined_call_operand.vmem [shape: bf16[2,96,32], index: 4, kind: input, shape index: {}]   ;;  %s2953_s5 = inlined_call_operand.vmem [shape: f32[2,96,1], index: 5, kind: input, shape index: {}]   ;;  %s2954_s6 = inlined_call_operand.vmem [shape: bf16[2,32,32], index: 6, kind: input, shape index: {}]   ;;  %s2955_s7 = inlined_call_operand.vmem [shape: f32[2,1,32], index: 7, kind: input, shape index: {}]   ;;  %s2956_s8 = inlined_call_operand.vmem [shape: f32[2,1,32], index: 8, kind: input, shape index: {}]   ;;  %s2957_s9 = inlined_call_operand.vmem [shape: f32[2,1,32], index: 9, kind: input, shape index: {}]   ;;  %s2958_s10 = inlined_call_operand.vmem [shape: bf16[2,32,64], index: 10, kind: input, shape index: {}]   ;;  %s2959_s11 = inlined_call_operand.vmem [shape: f32[2,1,64], index: 11, kind: input, shape index: {}]   ;;  %s2960_s12 = inlined_call_operand.vmem [shape: bf16[2,64,32], index: 12, kind: input, shape index: {}]   ;;  %s2961_s13 = inlined_call_operand.vmem [shape: f32[2,1,32], index: 13, kind: input, shape index: {}]   ;;  %s2962_s14 = inlined_call_operand.vmem [shape: f32[2,1,32], index: 14, kind: input, shape index: {}]   ;;  %s2963_s15 = inlined_call_operand.vmem [shape: f32[2,1,32], index: 15, kind: input, shape index: {}]   ;;  %s2964_s16 = inlined_call_operand.hbm [shape: f32[1,2,64], index: 16, kind: output, shape index: {}]  }
   0x1   :  { %2971 = sst [smem:[#allocation10_spill]] %s2948_s0 }
   0x2   :  { %2972 = sst [smem:[#allocation11_spill]] %s2949_s1 }
   0x3   :  { %2973 = sst [smem:[#allocation12_spill]] %s2950_s2 }
   0x4   :  { %2974 = sst [smem:[#allocation13_spill]] %s2951_s3 }
   0x5   :  { %2975 = sst [smem:[#allocation14_spill]] %s2952_s4 }
   0x6   :  { %2976 = sst [smem:[#allocation15_spill]] %s2954_s6 }
   0x7   :  { %2977 = sst [smem:[#allocation16_spill]] %s2964_s16 }
   0x8   :  { %21 = vsyncpa [#allocation4], 0  ;;  %s2599_s21 = smov 0   ;;  %s2601_s22 = smov 0  }
   0x9   :  { %s2603_s23 = smov 0  }
   0xa LB: > { %2978 = sst [smem:[#allocation6_spill]] %s2503_s22  ;;  %s36_s25 = sadd.s32 1, %s2503_s22  ;;  %s2507_s23 = sphi %s2603_s23, %s27_s23   ;;  %s2503_s22 = sphi %s2601_s22, %s3000_s22   ;;  %s2499_s21 = sphi %s2599_s21, %s2999_s21  }
   0xb   : > { %2979 = sst [smem:[#allocation7_spill]] %s2507_s23  ;;  %p37_p0 = scmp.ge.s32.totalorder %s36_s25, 2 }
   0xc   : > { %p2171_p1 = scmp.ge.s32.totalorder %s2507_s23, 1  ;;  %p591_p2 = scmp.lt.s32.totalorder %s2507_s23, 3 }
   0xd   : > { %s3002_s25 = smov (%p37_p0, %s36_s25), 0 }
   0xe   : > { %2980 = sst [smem:[#allocation8_spill]] %s3002_s25  ;;  %p592_p3 = pnand %p2171_p1, %p591_p2 }
  0x10   : > { %595 = sbr.rel (%p592_p3) target bundleno = 4138 (0x102a), region = 84 }
  0x17   : > { %p697_p4 = scmp.lt.s32.totalorder %s2499_s21, 1  ;;  %s2981_s6 = sld [smem:[#allocation15_spill]] }
  0x18   : > { %s2983_s4 = sld [smem:[#allocation14_spill]]  ;;  %p2180_p5 = scmp.ne.s32.totalorder %s2499_s21, 0 }
  0x19   : > { %s2622_s26 = scalar_select %p697_p4, %s2499_s21, 1 }
  0x1a   : > { %s2984_s23 = sld [smem:[#allocation10_spill]] (!%p2180_p5)  ;;  %vm752_vm0 = vcmask (!%p2180_p5), 261120   ;;  %s2986_s2 = sld [smem:[#allocation12_spill]] (!%p2180_p5) }
  0x1b   : > { %s2354_s27 = smul.u32 48, %s2622_s26  ;;  %s2226_s28 = sshll.u32 %s2622_s26, 4 }
  0x1c   : > { %s2355_s29 = smul.u32 96, %s2622_s26  ;;  %s2657_s19 = scalar_lea.vmem %s2958_s10, %s2226_s28 }
  0x1d   : > { %s2630_s17 = scalar_lea.vmem %s2981_s6, %s2226_s28  ;;  %s2228_s16 = sshll.u32 %s2622_s26, 5 }
  0x1e   : > { %2982 = sst [smem:[#allocation9_spill]] %s2630_s17  ;;  %s2635_s20 = scalar_lea.vmem %s2983_s4, %s2354_s27 }
  0x1f   : > { %s2644_s1 = scalar_lea.vmem %s2953_s5, %s2355_s29  ;;  %s2667_s4 = scalar_lea.vmem %s2960_s12, %s2228_s16 }
  0x20   : > { %s736_s6 = scalar_lea.vmem %s2961_s13, %s2622_s26  ;;  %s739_s18 = scalar_lea.vmem %s2962_s14, %s2622_s26  ;;  %v748_v0 = vld [vmem:[%s2984_s23] sm:$0xff] (!%p2180_p5) }
  0x21   : > { %s742_s30 = scalar_lea.vmem %s2963_s15, %s2622_s26  ;;  %747 = sbr.rel (%p2180_p5) target bundleno = 351 (0x15f), region = 88  ;;  %v753_v2 = vsel (!%p2180_p5), %vm752_vm0, %v748_v0, 0.0  ;;  %v2181_v21 = vld [vmem:[%s2986_s2] ss:$0 sm:$0xff] (!%p2180_p5) }
  0x22   : > { %s2985_s29 = smov (!%p2180_p5), %s2984_s23  ;;  %754 = vadd.xlane.f32.xlu0 (!%p2180_p5), %v753_v2  ;;  %s2987_s28 = sld [smem:[#allocation13_spill]] (!%p2180_p5) }
  0x23   : > { %v749_v1 = vld [vmem:[%s2985_s29 + $0x8] sm:$0xff] (!%p2180_p5) }
  0x24   : > { %v756_v3 = vsel (!%p2180_p5), %vm752_vm0, %v749_v1, 0.0 }
  0x26   : > { %757 = vadd.xlane.f32.xlu0 (!%p2180_p5), %v756_v3 }
  0x28   : > { %v2182_v23 = vld [vmem:[%s2987_s28] ss:$0 sm:$0xff] }
  0xaf   : > { %v755_v4 = vpop.xlane.xlu0 %754 }
  0xb0   : > { %v760_v5 = vmul.f32 0.03125, %v755_v4 }
  0xb2   : > { %v762_v6 = vsub.f32 %v748_v0, %v760_v5 }
  0xb3   : > { %v758_v7 = vpop.xlane.xlu0 %757 }
  0xb4   : > { %v761_v8 = vmul.f32 0.03125, %v758_v7  ;;  %v764_v9 = vmul.f32 %v762_v6, %v762_v6 }
  0xb6   : > { %v763_v10 = vsub.f32 %v749_v1, %v761_v8  ;;  %v766_v11 = vsel %vm752_vm0, %v764_v9, 0.0 }
  0xb7   : > { %767 = vadd.xlane.f32.xlu1 %v766_v11 }
  0xb8   : > { %v765_v12 = vmul.f32 %v763_v10, %v763_v10 }
  0xba   : > { %v769_v13 = vsel %vm752_vm0, %v765_v12, 0.0 }
  0xbb   : > { %770 = vadd.xlane.f32.xlu1 %v769_v13 }
 0x144   : > { %v768_v14 = vpop.xlane.xlu1 %767 }
 0x145   : > { %v772_v15 = vmul.f32 0.03125, %v768_v14 }
 0x147   : > { %v774_v16 = vadd.f32 1e-12, %v772_v15 }
 0x148   : > { %v771_v17 = vpop.xlane.xlu1 %770 }
 0x149   : > { %2391 = vrsqrt.f32 %v774_v16  ;;  %v773_v18 = vmul.f32 0.03125, %v771_v17 }
 0x14b   : > { %v775_v19 = vadd.f32 1e-12, %v773_v18 }
 0x14d   : > { %2393 = vrsqrt.f32 %v775_v19 }
 0x153   : > { %v2392_v20 = vpop.eup %2391 }
 0x154   : > { %v778_v22 = vmul.f32 %v2392_v20, %v762_v6 }
 0x156   : > { %v786_v24 = vmul.f32 %v2181_v21, %v778_v22 }
 0x157   : > { %v2394_v25 = vpop.eup %2393 }
 0x158   : > { %v794_v26 = vadd.f32 %v2182_v23, %v786_v24  ;;  %v779_v27 = vmul.f32 %v2394_v25, %v763_v10 }
 0x15a   : > { %796 = vst.msk [vmem:[#allocation2] sm:$0xff] %vm752_vm0, %v794_v26  ;;  %v787_v28 = vmul.f32 %v2181_v21, %v779_v27 }
 0x15c   : > { %v795_v29 = vadd.f32 %v2182_v23, %v787_v28 }
 0x15e   : > { %797 = vst.msk [vmem:[#allocation2 + $0x8] sm:$0xff] %vm752_vm0, %v795_v29 }
 0x15f PF: > { %vm917_vm1 = vcmask 261120   ;;  %v2397_v33 = vld [vmem:[%s2635_s20] sm:$0xff]   ;;  %v2509_v34 = vmov 0   ;;  %v2398_v37 = vld [vmem:[%s2635_s20 + $0x8] sm:$0xff]   ;;  %v2399_v39 = vld [vmem:[%s2635_s20 + $0x10] sm:$0xff]   ;;  %v2510_v41 = vmov 0.0   ;;  %s2990_s17 = scalar_lea.vmem %s2955_s7, %s2622_s26  ;;  %s2993_s23 = scalar_lea.vmem %s2959_s11, %s2622_s26 }
 0x160   : > { %2395 = vset.pattern.permute.xlu0 %v2509_v34  ;;  %2265 = vmatprep.mubr.msk.bf16.mxu0 %vm917_vm1, %v2397_v33  ;;  %v815_v36 = vld [vmem:[%s2644_s1] sm:$0xff]  ;;  %v2400_v40 = vld [vmem:[%s2635_s20 + $0x18] sm:$0xff]   ;;  %vm2511_vm2 = vmmov 0   ;;  %v2402_v43 = vld [vmem:[%s2635_s20 + $0x28] sm:$0xff]   ;;  %vm1043_vm3 = vcmask 1043456   ;;  %vm1039_vm4 = vcmask 64512  }
 0x161   : > { %v2700_v30 = vld [vmem:[#allocation2] sm:$0xff]  ;;  %829 = vperm.xlu0 %2395, %v815_v36   ;;  %2277 = vmatprep.subr.bf16.mxu1 %v2510_v41  ;;  %s2988_s24 = sld [smem:[#allocation11_spill]]  ;;  %vm1088_vm5 = vcmask 130048   ;;  %v816_v6 = vld [vmem:[%s2644_s1 + $0x8] sm:$0xff]  ;;  %v818_v26 = vld [vmem:[%s2644_s1 + $0x18] sm:$0xff]  ;;  %vm1821_vm6 = vcmask 523264  }
 0x162   : > { %v819_v38 = vld [vmem:[%s2644_s1 + $0x20] sm:$0xff]  ;;  %2279 = vmatprep.mubr.msk.bf16.mxu1 %vm2511_vm2, %v2510_v41  ;;  %v820_v20 = vld [vmem:[%s2644_s1 + $0x28] sm:$0xff]  ;;  %p2221_p6 = scmp.ne.s32.totalorder %s2499_s21, 1 }
 0x163   : > { %v2401_v42 = vld [vmem:[%s2635_s20 + $0x20] sm:$0xff]   ;;  %s2992_s20 = scalar_lea.vmem %s2957_s9, %s2622_s26  ;;  %vm1962_vm7 = vcmask (!%p2221_p6), 1040384   ;;  %vm1964_vm8 = vcmask (!%p2221_p6), 517120  }
 0x164   : > { %v823_v8 = vld [vmem:[%s2644_s1 + $0x40] sm:$0xff] }
 0x165   : > { %v2702_v31 = vld [vmem:[#allocation2 + $0x8] sm:$0xff]  ;;  %849 = vperm.xlu0 %2395, %v819_v38  }
 0x166   : > { %v814_v32 = vpack.c.bf16 %v2702_v31, %v2700_v30 }
 0x167   : > { %v2746_v60 = vld [vmem:[%s2988_s24] sm:$0xff]  ;;  %v2751_v62 = vld [vmem:[%s2988_s24 + $0x8] sm:$0xff] }
 0x168   : > { %2353 = vmatprep.subr.msk.bf16.mxu0 %vm917_vm1, %v814_v32  ;;  %v937_v35 = vsel %vm917_vm1, %v814_v32, 0 }
 0x169   : > { %2264 = vmatpush3.bf16.xpose.msra.mxu0 %v937_v35 }
 0x16a   : > { %2313 = vmatprep.subr.bf16.mxu0 %v2510_v41 }
 0x170   : > { %2266 = vmatmul.mubr.msk.bf16.vlgmr.msra.gmra.mrb[0].mxu0 %vm917_vm1, %v2398_v37 }
 0x171   : > { %2269 = vmatprep.mubr.msk.bf16.mxu0 %vm917_vm1, %v2399_v39 }
 0x178   : > { %2270 = vmatmul.mubr.msk.bf16.gmra.mrb[4].mxu0 %vm917_vm1, %v2400_v40 }
 0x179   : > { %2273 = vmatprep.mubr.msk.bf16.mxu0 %vm917_vm1, %v2401_v42 }
 0x180   : > { %2274 = vmatmul.mubr.msk.bf16.gmra.mrb[8].mxu0 %vm917_vm1, %v2402_v43 }
 0x181   : > { %2315 = vmatprep.mubr.msk.bf16.mxu0 %vm2511_vm2, %v2510_v41 }
 0x1e0   : > { %v830_v45 = vpop.permute.xlu0 %829 }
 0x1e4   : > { %v850_v52 = vpop.permute.xlu0 %849 }
 0x243   : > { %v2728_v44 = vpop.f32.mrb[0].mxu0 }
 0x244   : > { %v973_v46 = vpop.f32.mrb[1].mxu0 }
 0x245   : > { %v2730_v47 = vpop.f32.mrb[2].mxu0  ;;  %v974_v48 = vadd.f32 %v973_v46, %v830_v45 }
 0x246   : > { %v976_v49 = vpop.f32.mrb[3].mxu0 }
 0x247   : > { %v1020_v50 = vpack.c.bf16 %v974_v48, %v974_v48 }
 0x249   : > { %1023 = vxpose.xlu1.c.b16.start.end [1/1] (short) (narrow) %v1020_v50, 16 }
 0x24b   : > { %v2732_v51 = vpop.f32.mrb[4].mxu0 }
 0x24c   : > { %v989_v53 = vpop.f32.mrb[5].mxu0 }
 0x24d   : > { %v990_v54 = vadd.f32 %v989_v53, %v850_v52  ;;  %v2734_v55 = vpop.f32.mrb[6].mxu0  ;;  %2396 = vset.pattern.permute.xlu1 %v2509_v34 }
 0x24e   : > { %v2736_v56 = vpop.f32.mrb[7].mxu0 }
 0x24f   : > { %v1021_v57 = vpack.c.bf16 %v990_v54, %v990_v54 }
 0x251   : > { %v1045_v58 = vsel %vm1043_vm3, %v1021_v57, 0 }
 0x252   : > { %2278 = vmatpush3.bf16.msra.mxu1 %v1045_v58 }
 0x253   : > { %2283 = vmatprep.subr.bf16.mxu1 %v2510_v41  ;;  %v2758_v7 = vpop.f32.mrb[8].mxu0 }
 0x254   : > { %v1005_v9 = vpop.f32.mrb[9].mxu0 }
 0x255   : > { %v2764_v21 = vpop.f32.mrb[10].mxu0 }
 0x256   : > { %v2766_v22 = vpop.f32.mrb[11].mxu0 }
 0x2af   : > { %v1031_v59 = vpop.trf.xlu1 }
 0x2b0   : > { %2280 = vmatmul.mubr.msk.bf16.vlgmr.msra.gmra.mrb[0].mxu1 %vm1039_vm4, %v1031_v59 }
 0x2b1   : > { %2285 = vmatprep.mubr.msk.bf16.mxu1 %vm2511_vm2, %v2510_v41 }
 0x383   : > { %v1081_v61 = vpop.f32.mrb[0].mxu1 }
 0x384   : > { %v1082_v63 = vadd.f32 %v1081_v61, %v2746_v60  ;;  %v2281_v0 = vpop.f32.mrb[1].mxu1 }
 0x385   : > { %v1084_v1 = vpop.f32.mrb[2].mxu1  ;;  %v817_v0 = vld [vmem:[%s2644_s1 + $0x10] sm:$0xff] }
 0x386   : > { %v1085_v2 = vadd.f32 %v1084_v1, %v2751_v62  ;;  %v2282_v3 = vpop.f32.mrb[3].mxu1  ;;  %v1089_v4 = vsel %vm1088_vm5, %v1082_v63, -inf }
 0x387   : > { %1090 = vmax.xlane.f32.xlu1 %v1089_v4 }
 0x388   : > { %v1092_v5 = vsel %vm1088_vm5, %v1085_v2, -inf }
 0x389   : > { %1093 = vmax.xlane.f32.xlu0 %v1092_v5 }
 0x398   : > { %834 = vperm.xlu1 %2396, %v816_v6  }
 0x39f   : > { %869 = vperm.xlu0 %2395, %v823_v8  }
 0x414   : > { %v1091_v10 = vpop.xlane.xlu1 %1090 }
 0x415   : > { %v1095_v11 = vsub.f32 %v1082_v63, %v1091_v10 }
 0x416   : > { %v1094_v12 = vpop.xlane.xlu0 %1093 }
 0x417   : > { %v1097_v13 = vmul.f32 1.442695, %v1095_v11  ;;  %v1096_v14 = vsub.f32 %v1085_v2, %v1094_v12  ;;  %v824_v12 = vld [vmem:[%s2644_s1 + $0x48] sm:$0xff] }
 0x418   : > { %v835_v23 = vpop.permute.xlu1 %834 }
 0x419   : > { %2411 = vpow2.f32 %v1097_v13  ;;  %v1099_v15 = vmul.f32 1.442695, %v1096_v14  ;;  %v977_v24 = vadd.f32 %v976_v49, %v835_v23  ;;  %v821_v13 = vld [vmem:[%s2644_s1 + $0x30] sm:$0xff]  ;;  %v822_v14 = vld [vmem:[%s2644_s1 + $0x38] sm:$0xff] }
 0x41b   : > { %2413 = vpow2.f32 %v1099_v15  ;;  %v1158_v25 = vpack.c.bf16 %v977_v24, %v977_v24 }
 0x41e   : > { %v870_v27 = vpop.permute.xlu0 %869 }
 0x41f   : > { %v1006_v40 = vadd.f32 %v1005_v9, %v870_v27 }
 0x421   : > { %v1022_v43 = vpack.c.bf16 %v1006_v40, %v1006_v40 }
 0x423   : > { %v2412_v16 = vpop.eup %2411 }
 0x424   : > { %v1101_v17 = vsel %vm1088_vm5, %v2412_v16, 0.0 }
 0x425   : > { %v2414_v18 = vpop.eup %2413  ;;  %1102 = vadd.xlane.f32.xlu1 %v1101_v17 }
 0x426   : > { %v1104_v19 = vsel %vm1088_vm5, %v2414_v18, 0.0 }
 0x427   : > { %1105 = vadd.xlane.f32.xlu0 %v1104_v19 }
 0x43d   : > { %854 = vperm.xlu0 %2395, %v820_v20  }
 0x45b   : > { %1161 = vxpose.xlu0.c.b16.start.end [1/1] (short) (narrow) %v1158_v25, 16 }
 0x464   : > { %844 = vperm.xlu0 %2395, %v818_v26  }
 0x4b2   : > { %v1103_v28 = vpop.xlane.xlu1 %1102 }
 0x4b3   : > { %2415 = vrcp.f32 %v1103_v28 }
 0x4b4   : > { %v1106_v29 = vpop.xlane.xlu0 %1105 }
 0x4b5   : > { %2417 = vrcp.f32 %v1106_v29 }
 0x4bc   : > { %v855_v36 = vpop.permute.xlu0 %854 }
 0x4bd   : > { %v2416_v32 = vpop.eup %2415  ;;  %v993_v38 = vadd.f32 %v2736_v56, %v855_v36 }
 0x4be   : > { %v1109_v34 = vmul.f32 %v2416_v32, %v2412_v16 }
 0x4bf   : > { %v2418_v33 = vpop.eup %2417  ;;  %v1159_v42 = vpack.c.bf16 %v993_v38, %v993_v38 }
 0x4c0   : > { %v1110_v35 = vmul.f32 %v2418_v33, %v2414_v18 }
 0x4c1   : > { %v1181_v45 = vsel %vm1043_vm3, %v1159_v42, 0  ;;  %v1169_v46 = vpop.trf.xlu0 }
 0x4c2   : > { %v1111_v37 = vpack.c.bf16 %v1110_v35, %v1109_v34 }
 0x4c4   : > { %v1116_v39 = vsel %vm1088_vm5, %v1111_v37, 0 }
 0x4c5   : > { %2284 = vmatpush3.bf16.xpose.msra.mxu1 %v1116_v39 }
 0x4c6   : > { %2289 = vmatprep.subr.bf16.mxu1 %v2510_v41 }
 0x4cc   : > { %2286 = vmatmul.mubr.msk.bf16.vlgmr.msra.gmra.mrb[4].mxu1 %vm1088_vm5, %v1022_v43 }
 0x4cd   : > { %2290 = vmatpush3.bf16.msra.mxu1 %v1181_v45  ;;  %2291 = vmatprep.mubr.msk.bf16.mxu1 %vm2511_vm2, %v2510_v41 }
 0x4ce   : > { %2295 = vmatprep.subr.bf16.mxu1 %v2510_v41 }
 0x4d4   : > { %2292 = vmatmul.mubr.msk.bf16.vlgmr.msra.gmra.mrb[8].mxu1 %vm1039_vm4, %v1169_v46 }
 0x4d5   : > { %2297 = vmatprep.mubr.msk.bf16.mxu1 %vm2511_vm2, %v2510_v41 }
 0x4e3   : > { %v845_v15 = vpop.permute.xlu0 %844 }
 0x4e4   : > { %v985_v16 = vadd.f32 %v2730_v47, %v845_v15 }
 0x4e6   : > { %v1428_v17 = vpack.c.bf16 %v985_v16, %v985_v16 }
 0x59f   : > { %v2780_v48 = vpop.f32.mrb[4].mxu1 }
 0x5a0   : > { %v2287_v49 = vpop.f32.mrb[5].mxu1 }
 0x5a1   : > { %v1155_v50 = vpop.f32.mrb[6].mxu1 }
 0x5a2   : > { %v2288_v52 = vpop.f32.mrb[7].mxu1 }
 0x5a7   : > { %v1217_v53 = vpop.f32.mrb[8].mxu1 }
 0x5a8   : > { %v1218_v54 = vadd.f32 %v1217_v53, %v2746_v60  ;;  %v2293_v56 = vpop.f32.mrb[9].mxu1 }
 0x5a9   : > { %v1220_v57 = vpop.f32.mrb[10].mxu1 }
 0x5aa   : > { %v1221_v58 = vadd.f32 %v1220_v57, %v2751_v62  ;;  %v2294_v59 = vpop.f32.mrb[11].mxu1  ;;  %v1224_v61 = vsel %vm1088_vm5, %v1218_v54, -inf }
 0x5ab   : > { %1225 = vmax.xlane.f32.xlu1 %v1224_v61 }
 0x5ac   : > { %v1227_v63 = vsel %vm1088_vm5, %v1221_v58, -inf }
 0x5af   : > { %1228 = vmax.xlane.f32.xlu1 %v1227_v63 }
 0x5c0   : > { %839 = vperm.xlu1 %2396, %v817_v0  }
 0x638   : > { %v1226_v1 = vpop.xlane.xlu1 %1225 }
 0x639   : > { %v1230_v2 = vsub.f32 %v1218_v54, %v1226_v1 }
 0x63b   : > { %v1232_v3 = vmul.f32 1.442695, %v1230_v2 }
 0x63c   : > { %v1229_v4 = vpop.xlane.xlu1 %1228 }
 0x63d   : > { %2419 = vpow2.f32 %v1232_v3  ;;  %v1231_v5 = vsub.f32 %v1221_v58, %v1229_v4 }
 0x63f   : > { %v1234_v6 = vmul.f32 1.442695, %v1231_v5 }
 0x640   : > { %v840_v18 = vpop.permute.xlu1 %839 }
 0x641   : > { %2421 = vpow2.f32 %v1234_v6  ;;  %v982_v19 = vadd.f32 %v2728_v44, %v840_v18 }
 0x643   : > { %v1293_v20 = vpack.c.bf16 %v982_v19, %v982_v19 }
 0x647   : > { %v2420_v8 = vpop.eup %2419 }
 0x648   : > { %v1236_v9 = vsel %vm1088_vm5, %v2420_v8, 0.0 }
 0x649   : > { %1237 = vadd.xlane.f32.xlu1 %v1236_v9 }
 0x64b   : > { %v2422_v10 = vpop.eup %2421 }
 0x64c   : > { %v1239_v11 = vsel %vm1088_vm5, %v2422_v10, 0.0 }
 0x64d   : > { %1240 = vadd.xlane.f32.xlu0 %v1239_v11 }
 0x65a   : > { %874 = vperm.xlu1 %2396, %v824_v12  }
 0x663   : > { %859 = vperm.xlu0 %2395, %v821_v13  }
 0x667   : > { %864 = vperm.xlu0 %2395, %v822_v14  }
 0x67d   : > { %1431 = vxpose.xlu1.c.b16.start.end [1/1] (short) (narrow) %v1428_v17, 16 }
 0x685   : > { %1296 = vxpose.xlu0.c.b16.start.end [1/1] (short) (narrow) %v1293_v20, 16 }
 0x6d6   : > { %v1238_v23 = vpop.xlane.xlu1 %1237 }
 0x6d7   : > { %2423 = vrcp.f32 %v1238_v23 }
 0x6da   : > { %v1241_v24 = vpop.xlane.xlu0 %1240  ;;  %v875_v47 = vpop.permute.xlu1 %874 }
 0x6db   : > { %2425 = vrcp.f32 %v1241_v24  ;;  %v1009_v38 = vadd.f32 %v2766_v22, %v875_v47 }
 0x6e1   : > { %v2424_v26 = vpop.eup %2423 }
 0x6e2   : > { %v860_v25 = vpop.permute.xlu0 %859  ;;  %v1244_v29 = vmul.f32 %v2424_v26, %v2420_v8  ;;  %v826_v26 = vld [vmem:[%s2644_s1 + $0x58] sm:$0xff] }
 0x6e3   : > { %v998_v36 = vadd.f32 %v2732_v51, %v860_v25  ;;  %v1439_v39 = vpop.trf.xlu1 }
 0x6e5   : > { %v2426_v27 = vpop.eup %2425  ;;  %v1294_v40 = vpack.c.bf16 %v998_v36, %v998_v36 }
 0x6e6   : > { %v865_v28 = vpop.permute.xlu0 %864  ;;  %v1245_v32 = vmul.f32 %v2426_v27, %v2422_v10  ;;  %v825_v27 = vld [vmem:[%s2644_s1 + $0x50] sm:$0xff]  ;;  %s2989_s1 = sld [smem:[#allocation9_spill]] }
 0x6e7   : > { %v1001_v33 = vadd.f32 %v2734_v55, %v865_v28  ;;  %v1160_v55 = vpack.c.bf16 %v1009_v38, %v1009_v38  ;;  %v1316_v51 = vsel %vm1043_vm3, %v1294_v40, 0 }
 0x6e8   : > { %v1246_v34 = vpack.c.bf16 %v1245_v32, %v1244_v29 }
 0x6e9   : > { %v1429_v35 = vpack.c.bf16 %v1001_v33, %v1001_v33 }
 0x6ea   : > { %v1251_v44 = vsel %vm1088_vm5, %v1246_v34, 0 }
 0x6eb   : > { %v1451_v37 = vsel %vm1043_vm3, %v1429_v35, 0  ;;  %2296 = vmatpush3.bf16.xpose.msra.mxu1 %v1251_v44  ;;  %v1304_v22 = vpop.trf.xlu0 }
 0x6ec   : > { %2314 = vmatpush3.bf16.msra.mxu0 %v1451_v37  ;;  %2301 = vmatprep.subr.bf16.mxu1 %v2510_v41 }
 0x6ed   : > { %2325 = vmatprep.subr.bf16.mxu0 %v2510_v41 }
 0x6ef   : > { %2316 = vmatmul.mubr.msk.bf16.vlgmr.msra.gmra.mrb[12].mxu0 %vm1039_vm4, %v1439_v39 }
 0x6f0   : > { %2329 = vmatprep.mubr.msk.bf16.mxu0 %vm2511_vm2, %v2510_v41 }
 0x6f2   : > { %2298 = vmatmul.mubr.msk.bf16.vlgmr.msra.gmra.mrb[12].mxu1 %vm1088_vm5, %v1160_v55 }
 0x6f3   : > { %2302 = vmatpush3.bf16.msra.mxu1 %v1316_v51  ;;  %2303 = vmatprep.mubr.msk.bf16.mxu1 %vm2511_vm2, %v2510_v41 }
 0x6f4   : > { %2307 = vmatprep.subr.bf16.mxu1 %v2510_v41 }
 0x6fa   : > { %2304 = vmatmul.mubr.msk.bf16.vlgmr.msra.gmra.mrb[16].mxu1 %vm1039_vm4, %v1304_v22 }
 0x6fb   : > { %2309 = vmatprep.mubr.msk.bf16.mxu1 %vm2511_vm2, %v2510_v41 }
 0x7c2   : > { %v1487_v42 = vpop.f32.mrb[12].mxu0 }
 0x7c3   : > { %v2317_v43 = vpop.f32.mrb[13].mxu0  ;;  %v1488_v59 = vadd.f32 %v1487_v42, %v2746_v60 }
 0x7c4   : > { %v1490_v45 = vpop.f32.mrb[14].mxu0 }
 0x7c5   : > { %v1287_v46 = vpop.f32.mrb[12].mxu1  ;;  %v2318_v49 = vpop.f32.mrb[15].mxu0  ;;  %v1491_v3 = vadd.f32 %v1490_v45, %v2751_v62 }
 0x7c6   : > { %v1563_v50 = vpack.c.bf16 %v1287_v46, %v2780_v48  ;;  %v2299_v52 = vpop.f32.mrb[13].mxu1  ;;  %v1494_v48 = vsel %vm1088_vm5, %v1488_v59, -inf }
 0x7c7   : > { %v1290_v53 = vpop.f32.mrb[14].mxu1  ;;  %v1497_v4 = vsel %vm1088_vm5, %v1491_v3, -inf  ;;  %v2404_v52 = vld [vmem:[%s2989_s1 + $0x8] sm:$0xff]  }
 0x7c8   : > { %v2300_v54 = vpop.f32.mrb[15].mxu1 }
 0x7cd   : > { %v1352_v56 = vpop.f32.mrb[16].mxu1 }
 0x7ce   : > { %v1353_v57 = vadd.f32 %v1352_v56, %v2746_v60  ;;  %v2305_v58 = vpop.f32.mrb[17].mxu1 }
 0x7cf   : > { %v1355_v61 = vpop.f32.mrb[18].mxu1 }
 0x7d0   : > { %v1356_v63 = vadd.f32 %v1355_v61, %v2751_v62  ;;  %v1359_v0 = vsel %vm1088_vm5, %v1353_v57, -inf  ;;  %v2306_v1 = vpop.f32.mrb[19].mxu1 }
 0x7d1   : > { %1360 = vmax.xlane.f32.xlu0 %v1359_v0  ;;  %v2203_v1 = vld [vmem:[%s2990_s17] ss:$0 sm:$0xff] }
 0x7d2   : > { %v1362_v2 = vsel %vm1088_vm5, %v1356_v63, -inf }
 0x7d3   : > { %1363 = vmax.xlane.f32.xlu1 %v1362_v2 }
 0x7d5   : > { %1495 = vmax.xlane.f32.xlu0 %v1494_v48 }
 0x7d9   : > { %1498 = vmax.xlane.f32.xlu0 %v1497_v4 }
 0x85e   : > { %v1361_v5 = vpop.xlane.xlu0 %1360 }
 0x85f   : > { %v1365_v60 = vsub.f32 %v1353_v57, %v1361_v5 }
 0x860   : > { %v1364_v6 = vpop.xlane.xlu1 %1363 }
 0x861   : > { %v1367_v10 = vmul.f32 1.442695, %v1365_v60  ;;  %v1366_v11 = vsub.f32 %v1356_v63, %v1364_v6 }
 0x862   : > { %v1496_v8 = vpop.xlane.xlu0 %1495 }
 0x863   : > { %v1500_v9 = vsub.f32 %v1488_v59, %v1496_v8  ;;  %v1369_v15 = vmul.f32 1.442695, %v1366_v11 }
 0x865   : > { %v1502_v12 = vmul.f32 1.442695, %v1500_v9 }
 0x866   : > { %v1499_v13 = vpop.xlane.xlu0 %1498 }
 0x867   : > { %2427 = vpow2.f32 %v1502_v12  ;;  %v1501_v14 = vsub.f32 %v1491_v3, %v1499_v13 }
 0x868   : > { %2429 = vpow2.f32 %v1367_v10 }
 0x869   : > { %v1504_v16 = vmul.f32 1.442695, %v1501_v14 }
 0x86b   : > { %2431 = vpow2.f32 %v1504_v16 }
 0x86c   : > { %2433 = vpow2.f32 %v1369_v15 }
 0x871   : > { %v2428_v62 = vpop.eup %2427 }
 0x872   : > { %v1506_v17 = vsel %vm1088_vm5, %v2428_v62, 0.0  ;;  %v2430_v18 = vpop.eup %2429 }
 0x873   : > { %1507 = vadd.xlane.f32.xlu0 %v1506_v17  ;;  %v1371_v20 = vsel %vm1088_vm5, %v2430_v18, 0.0 }
 0x875   : > { %v2432_v19 = vpop.eup %2431 }
 0x876   : > { %v1509_v23 = vsel %vm1088_vm5, %v2432_v19, 0.0  ;;  %v2434_v24 = vpop.eup %2433 }
 0x877   : > { %1372 = vadd.xlane.f32.xlu0 %v1371_v20  ;;  %1510 = vadd.xlane.f32.xlu1 %v1509_v23  ;;  %v1374_v25 = vsel %vm1088_vm5, %v2434_v24, 0.0 }
 0x87b   : > { %1375 = vadd.xlane.f32.xlu1 %v1374_v25 }
 0x88c   : > { %884 = vperm.xlu1 %2396, %v826_v26  }
 0x88d   : > { %879 = vperm.xlu0 %2395, %v825_v27  }
 0x8af   : > { %1576 = vxpose.xlu1.c.b16.start [1/2] (short) (narrow) %v1563_v50, 16  ;;  %v2403_v50 = vld [vmem:[%s2989_s1] sm:$0xff]  }
 0x8b0   : > { %2326 = vmatpush3.bf16.msra.mxu0 %v2403_v50 }
 0x8b1   : > { %2327 = vmatprep.subr.bf16.mxu0 %v2510_v41 }
 0x8b4   : > { %2328 = vmatpush3.bf16.msra.mxu0 %v2404_v52 }
 0x8b5   : > { %2341 = vmatprep.subr.bf16.mxu0 %v2510_v41 }
 0x900   : > { %v1508_v28 = vpop.xlane.xlu0 %1507 }
 0x904   : > { %v1373_v29 = vpop.xlane.xlu0 %1372  ;;  %v1511_v32 = vpop.xlane.xlu1 %1510 }
 0x905   : > { %2435 = vrcp.f32 %v1373_v29 }
 0x908   : > { %v1376_v33 = vpop.xlane.xlu1 %1375 }
 0x909   : > { %2437 = vrcp.f32 %v1376_v33 }
 0x90a   : > { %2439 = vrcp.f32 %v1511_v32 }
 0x90b   : > { %2441 = vrcp.f32 %v1508_v28 }
 0x90c   : > { %v880_v39 = vpop.permute.xlu0 %879  ;;  %v885_v45 = vpop.permute.xlu1 %884 }
 0x90d   : > { %v1014_v51 = vadd.f32 %v2758_v7, %v880_v39  ;;  %v1017_v49 = vadd.f32 %v2764_v21, %v885_v45  ;;  %v2407_v39 = vld [vmem:[%s2667_s4] sm:$0xff]  }
 0x90f   : > { %v2436_v47 = vpop.eup %2435  ;;  %v1295_v43 = vpack.c.bf16 %v1014_v51, %v1014_v51  ;;  %v1430_v7 = vpack.c.bf16 %v1017_v49, %v1017_v49  ;;  %v2410_v51 = vld [vmem:[%s2667_s4 + $0x18] sm:$0xff]  }
 0x910   : > { %v1379_v35 = vmul.f32 %v2436_v47, %v2430_v18 }
 0x913   : > { %v2438_v34 = vpop.eup %2437 }
 0x914   : > { %v1380_v36 = vmul.f32 %v2438_v34, %v2434_v24  ;;  %v2440_v44 = vpop.eup %2439 }
 0x915   : > { %v2442_v38 = vpop.eup %2441  ;;  %v1515_v55 = vmul.f32 %v2440_v44, %v2432_v19  ;;  %v2406_v19 = vld [vmem:[%s2657_s19 + $0x8] sm:$0xff]  }
 0x916   : > { %v1381_v37 = vpack.c.bf16 %v1380_v36, %v1379_v35  ;;  %v1514_v22 = vmul.f32 %v2442_v38, %v2428_v62  ;;  %v2208_v35 = vld [vmem:[%s2992_s20] ss:$0 sm:$0xff] }
 0x918   : > { %v1386_v40 = vsel %vm1088_vm5, %v1381_v37, 0  ;;  %v1516_v42 = vpack.c.bf16 %v1515_v55, %v1514_v22  ;;  %v2409_v55 = vld [vmem:[%s2667_s4 + $0x10] sm:$0xff]   ;;  %v2209_v22 = vld [vmem:[%s2993_s23] ss:$0 sm:$0xff] }
 0x919   : > { %2308 = vmatpush3.bf16.xpose.msra.mxu1 %v1386_v40  ;;  %v2408_v40 = vld [vmem:[%s2667_s4 + $0x8] sm:$0xff]  }
 0x91a   : > { %2319 = vmatprep.subr.bf16.mxu1 %v2510_v41  ;;  %v1521_v46 = vsel %vm1088_vm5, %v1516_v42, 0 }
 0x920   : > { %2310 = vmatmul.mubr.msk.bf16.vlgmr.msra.gmra.mrb[20].mxu1 %vm1088_vm5, %v1295_v43 }
 0x921   : > { %2320 = vmatpush3.bf16.xpose.msra.mxu1 %v1521_v46  ;;  %2321 = vmatprep.mubr.msk.bf16.mxu1 %vm2511_vm2, %v2510_v41 }
 0x922   : > { %2333 = vmatprep.subr.bf16.mxu1 %v2510_v41 }
 0x928   : > { %2322 = vmatmul.mubr.msk.bf16.vlgmr.msra.gmra.mrb[24].mxu1 %vm1088_vm5, %v1430_v7 }
 0x929   : > { %2337 = vmatprep.mubr.msk.bf16.mxu1 %vm2511_vm2, %v2510_v41 }
 0x9f3   : > { %v1422_v53 = vpop.f32.mrb[20].mxu1 }
 0x9f4   : > { %v2311_v54 = vpop.f32.mrb[21].mxu1 }
 0x9f5   : > { %v1425_v21 = vpop.f32.mrb[22].mxu1 }
 0x9f6   : > { %v2312_v56 = vpop.f32.mrb[23].mxu1 }
 0x9fb   : > { %v1557_v57 = vpop.f32.mrb[24].mxu1 }
 0x9fc   : > { %v1564_v58 = vpack.c.bf16 %v1557_v57, %v1422_v53  ;;  %v2323_v59 = vpop.f32.mrb[25].mxu1 }
 0x9fd   : > { %v1560_v61 = vpop.f32.mrb[26].mxu1 }
 0x9fe   : > { %1577 = vxpose.xlu1.c.b16.end [2/2] (short) (narrow) %v1564_v58, 16  ;;  %v2324_v63 = vpop.f32.mrb[27].mxu1 }
 0xa60   : > { %v1584_v0 = vpop.trf.xlu1 }
 0xa61   : > { %2330 = vmatmul.mubr.msk.bf16.vlgmr.msra.gmra.mrb[16].mxu0 %vm917_vm1, %v1584_v0 }
 0xa62   : > { %2349 = vmatprep.mubr.msk.bf16.mxu0 %vm2511_vm2, %v2510_v41  ;;  %2342 = vmatpush3.bf16.msra.mxu0 %v2407_v39 }
 0xa63   : > { %2343 = vmatprep.subr.bf16.mxu0 %v2510_v41 }
 0xa66   : > { %2344 = vmatpush3.bf16.msra.mxu0 %v2408_v40 }
 0xa67   : > { %2345 = vmatprep.subr.bf16.mxu0 %v2510_v41 }
 0xa6a   : > { %2346 = vmatpush3.bf16.msra.mxu0 %v2409_v55 }
 0xa6b   : > { %2347 = vmatprep.subr.bf16.mxu0 %v2510_v41 }
 0xa6e   : > { %2348 = vmatpush3.bf16.msra.mxu0 %v2410_v51 }
 0xb34   : > { %v1641_v2 = vpop.f32.mrb[16].mxu0 }
 0xb35   : > { %v1642_v48 = vadd.f32 %v2203_v1, %v1641_v2  ;;  %v2331_v3 = vpop.f32.mrb[17].mxu0 }
 0xb36   : > { %v1644_v4 = vpop.f32.mrb[18].mxu0 }
 0xb37   : > { %v1645_v5 = vadd.f32 %v2203_v1, %v1644_v4  ;;  %v1648_v60 = vadd.f32 %v1642_v48, %v2700_v30  ;;  %v2332_v6 = vpop.f32.mrb[19].mxu0 }
 0xb39   : > { %v1652_v8 = vsel %vm917_vm1, %v1648_v60, 0.0  ;;  %v1649_v9 = vadd.f32 %v1645_v5, %v2702_v31  ;;  %v2405_v31 = vld [vmem:[%s2657_s19] sm:$0xff]   ;;  %s2991_s19 = scalar_lea.vmem %s2956_s8, %s2622_s26  ;;  %s2512_s26 = smov (!%p2221_p6), 32  }
 0xb3a   : > { %1653 = vadd.xlane.f32.xlu0 %v1652_v8  ;;  %2334 = vmatpush3.bf16.msra.mxu1 %v2405_v31  ;;  %v2207_v32 = vld [vmem:[%s2991_s19] ss:$0 sm:$0xff] }
 0xb3b   : > { %v1655_v10 = vsel %vm917_vm1, %v1649_v9, 0.0  ;;  %2335 = vmatprep.subr.bf16.mxu1 %v2510_v41 }
 0xb3e   : > { %1656 = vadd.xlane.f32.xlu0 %v1655_v10  ;;  %2336 = vmatpush3.bf16.msra.mxu1 %v2406_v19 }
 0xbc7   : > { %v1654_v11 = vpop.xlane.xlu0 %1653 }
 0xbc8   : > { %v1659_v12 = vmul.f32 0.03125, %v1654_v11 }
 0xbca   : > { %v1661_v13 = vsub.f32 %v1648_v60, %v1659_v12  ;;  %v2213_v60 = vld [vmem:[%s736_s6] ss:$0 sm:$0xff] }
 0xbcb   : > { %v1657_v14 = vpop.xlane.xlu0 %1656 }
 0xbcc   : > { %v1660_v15 = vmul.f32 0.03125, %v1657_v14  ;;  %v1663_v16 = vmul.f32 %v1661_v13, %v1661_v13 }
 0xbce   : > { %v1662_v62 = vsub.f32 %v1649_v9, %v1660_v15  ;;  %v1665_v30 = vsel %vm917_vm1, %v1663_v16, 0.0 }
 0xbcf   : > { %1666 = vadd.xlane.f32.xlu0 %v1665_v30 }
 0xbd0   : > { %v1664_v17 = vmul.f32 %v1662_v62, %v1662_v62 }
 0xbd2   : > { %v1668_v18 = vsel %vm917_vm1, %v1664_v17, 0.0 }
 0xbd3   : > { %1669 = vadd.xlane.f32.xlu1 %v1668_v18 }
 0xc5c   : > { %v1667_v20 = vpop.xlane.xlu0 %1666 }
 0xc5d   : > { %v1671_v23 = vmul.f32 0.03125, %v1667_v20 }
 0xc5f   : > { %v1673_v24 = vadd.f32 1e-12, %v1671_v23 }
 0xc60   : > { %v1670_v25 = vpop.xlane.xlu1 %1669 }
 0xc61   : > { %2443 = vrsqrt.f32 %v1673_v24  ;;  %v1672_v26 = vmul.f32 0.03125, %v1670_v25 }
 0xc63   : > { %v1674_v27 = vadd.f32 1e-12, %v1672_v26 }
 0xc65   : > { %2445 = vrsqrt.f32 %v1674_v27 }
 0xc6b   : > { %v2444_v28 = vpop.eup %2443 }
 0xc6c   : > { %v1677_v29 = vmul.f32 %v2444_v28, %v1661_v13 }
 0xc6e   : > { %v1685_v47 = vmul.f32 %v2207_v32, %v1677_v29 }
 0xc6f   : > { %v2446_v33 = vpop.eup %2445 }
 0xc70   : > { %v1678_v34 = vmul.f32 %v2446_v33, %v1662_v62  ;;  %v1693_v44 = vadd.f32 %v2208_v35, %v1685_v47 }
 0xc72   : > { %v1686_v36 = vmul.f32 %v2207_v32, %v1678_v34  ;;  %v2219_v34 = vld [vmem:[%s739_s18] ss:$0 sm:$0xff] }
 0xc74   : > { %v1694_v37 = vadd.f32 %v2208_v35, %v1686_v36  ;;  %v2220_v36 = vld [vmem:[%s742_s30] ss:$0 sm:$0xff] }
 0xc76   : > { %v1695_v38 = vpack.c.bf16 %v1694_v37, %v1693_v44 }
 0xc78   : > { %2338 = vmatmul.mubr.msk.bf16.vlgmr.msra.gmra.mrb[28].mxu1 %vm917_vm1, %v1695_v38 }
 0xd4b   : > { %v1756_v42 = vpop.f32.mrb[28].mxu1 }
 0xd4c   : > { %v1757_v43 = vadd.f32 %v2209_v22, %v1756_v42  ;;  %v2339_v45 = vpop.f32.mrb[29].mxu1 }
 0xd4d   : > { %v1759_v46 = vpop.f32.mrb[30].mxu1 }
 0xd4e   : > { %v1765_v49 = vmul.f32 0.044715, %v1757_v43  ;;  %v1760_v7 = vadd.f32 %v2209_v22, %v1759_v46  ;;  %v2340_v50 = vpop.f32.mrb[31].mxu1  ;;  %v1763_v1 = vmul.f32 0.5, %v1757_v43 }
 0xd50   : > { %v1767_v52 = vmul.f32 %v1765_v49, %v1757_v43  ;;  %v1766_v53 = vmul.f32 0.044715, %v1760_v7  ;;  %v1764_v2 = vmul.f32 0.5, %v1760_v7 }
 0xd52   : > { %v1769_v54 = vmul.f32 %v1767_v52, %v1757_v43  ;;  %v1768_v21 = vmul.f32 %v1766_v53, %v1760_v7 }
 0xd54   : > { %v1771_v56 = vadd.f32 %v1769_v54, %v1757_v43  ;;  %v1770_v57 = vmul.f32 %v1768_v21, %v1760_v7 }
 0xd56   : > { %v1773_v41 = vmul.f32 0.7978846, %v1771_v56  ;;  %v1772_v58 = vadd.f32 %v1770_v57, %v1760_v7 }
 0xd58   : > { %2447 = vtanh.f32 %v1773_v41  ;;  %v1774_v59 = vmul.f32 0.7978846, %v1772_v58 }
 0xd5a   : > { %2449 = vtanh.f32 %v1774_v59 }
 0xd62   : > { %v2448_v61 = vpop.eup %2447 }
 0xd63   : > { %v1777_v63 = vadd.f32 1.0, %v2448_v61 }
 0xd64   : > { %v2450_v0 = vpop.eup %2449 }
 0xd65   : > { %v1778_v48 = vadd.f32 1.0, %v2450_v0  ;;  %v1779_v3 = vmul.f32 %v1777_v63, %v1763_v1 }
 0xd67   : > { %v1780_v4 = vmul.f32 %v1778_v48, %v1764_v2 }
 0xd69   : > { %v1781_v5 = vpack.c.bf16 %v1780_v4, %v1779_v3 }
 0xd6b   : > { %2350 = vmatmul.mubr.msk.bf16.vlgmr.msra.gmra.mrb[20].mxu0 %vm1821_vm6, %v1781_v5 }
 0xe3e   : > { %v1859_v6 = vpop.f32.mrb[20].mxu0 }
 0xe3f   : > { %v1860_v8 = vadd.f32 %v2213_v60, %v1859_v6  ;;  %v2351_v9 = vpop.f32.mrb[21].mxu0 }
 0xe40   : > { %v1862_v10 = vpop.f32.mrb[22].mxu0 }
 0xe41   : > { %v1863_v11 = vadd.f32 %v2213_v60, %v1862_v10  ;;  %v2352_v12 = vpop.f32.mrb[23].mxu0  ;;  %v1866_v13 = vadd.f32 %v1860_v8, %v1693_v44 }
 0xe43   : > { %v1870_v14 = vsel %vm917_vm1, %v1866_v13, 0.0  ;;  %v1867_v15 = vadd.f32 %v1863_v11, %v1694_v37 }
 0xe44   : > { %1871 = vadd.xlane.f32.xlu0 %v1870_v14 }
 0xe45   : > { %v1873_v16 = vsel %vm917_vm1, %v1867_v15, 0.0 }
 0xe48   : > { %1874 = vadd.xlane.f32.xlu0 %v1873_v16 }
 0xed1   : > { %v1872_v62 = vpop.xlane.xlu0 %1871 }
 0xed2   : > { %v1876_v30 = vmul.f32 0.03125, %v1872_v62 }
 0xed4   : > { %v1878_v17 = vsub.f32 %v1866_v13, %v1876_v30 }
 0xed5   : > { %v1875_v18 = vpop.xlane.xlu0 %1874 }
 0xed6   : > { %v1877_v31 = vmul.f32 0.03125, %v1875_v18  ;;  %v1880_v19 = vmul.f32 %v1878_v17, %v1878_v17 }
 0xed8   : > { %v1879_v20 = vsub.f32 %v1867_v15, %v1877_v31  ;;  %v1882_v23 = vsel %vm917_vm1, %v1880_v19, 0.0 }
 0xed9   : > { %1883 = vadd.xlane.f32.xlu0 %v1882_v23 }
 0xeda   : > { %v1881_v24 = vmul.f32 %v1879_v20, %v1879_v20 }
 0xedc   : > { %v1885_v25 = vsel %vm917_vm1, %v1881_v24, 0.0 }
 0xedd   : > { %1886 = vadd.xlane.f32.xlu1 %v1885_v25 }
 0xf66   : > { %v1884_v26 = vpop.xlane.xlu0 %1883 }
 0xf67   : > { %v1888_v27 = vmul.f32 0.03125, %v1884_v26 }
 0xf69   : > { %v1890_v28 = vadd.f32 1e-12, %v1888_v27 }
 0xf6a   : > { %v1887_v29 = vpop.xlane.xlu1 %1886 }
 0xf6b   : > { %2451 = vrsqrt.f32 %v1890_v28  ;;  %v1889_v32 = vmul.f32 0.03125, %v1887_v29 }
 0xf6d   : > { %v1891_v33 = vadd.f32 1e-12, %v1889_v32 }
 0xf6f   : > { %2453 = vrsqrt.f32 %v1891_v33 }
 0xf75   : > { %v2452_v47 = vpop.eup %2451 }
 0xf76   : > { %v1894_v35 = vmul.f32 %v2452_v47, %v1878_v17 }
 0xf78   : > { %v1902_v44 = vmul.f32 %v2219_v34, %v1894_v35 }
 0xf79   : > { %v2454_v37 = vpop.eup %2453 }
 0xf7a   : > { %v1910_v38 = vadd.f32 %v2220_v36, %v1902_v44  ;;  %v1895_v39 = vmul.f32 %v2454_v37, %v1879_v20  ;;  %1917 = sbr.rel (%p2221_p6) target bundleno = 4103 (0x1007), region = 92 }
 0xf7c   : > { %1912 = vst.msk [vmem:[#allocation2] sm:$0xff] %vm917_vm1, %v1910_v38  ;;  %v1903_v40 = vmul.f32 %v2219_v34, %v1895_v39  ;;  %v1927_v22 = vsel (!%p2221_p6), %vm917_vm1, %v1910_v38, -inf  ;;  %v1918_v58 = vsel (!%p2221_p6), %vm917_vm1, %v1910_v38, 0.0 }
 0xf7d   : > { %v1928_v43 = vrot.slane (!%p2221_p6), %v1927_v22, 4  ;;  %v1919_v61 = vrot.slane (!%p2221_p6), %v1918_v58, 4 }
 0xf7e   : > { %v1911_v55 = vadd.f32 %v2220_v36, %v1903_v40 }
 0xf7f   : > { %v1929_v46 = vmax.f32 (!%p2221_p6), %v1927_v22, %v1928_v43  ;;  %v1920_v0 = vadd.f32 (!%p2221_p6), %v1919_v61, %v1918_v58 }
 0xf80   : > { %1913 = vst.msk [vmem:[#allocation2 + $0x8] sm:$0xff] %vm917_vm1, %v1911_v55  ;;  %v1947_v51 = vsel (!%p2221_p6), %vm917_vm1, %v1911_v55, -inf  ;;  %v1939_v57 = vsel (!%p2221_p6), %vm917_vm1, %v1911_v55, 0.0 }
 0xf81   : > { %v1948_v42 = vrot.slane %v1947_v51, 4  ;;  %v1930_v7 = vrot.slane %v1929_v46, 2  ;;  %v1940_v41 = vrot.slane %v1939_v57, 4  ;;  %v1921_v2 = vrot.slane %v1920_v0, 2 }
 0xf83   : > { %v1949_v45 = vmax.f32 %v1947_v51, %v1948_v42  ;;  %v1931_v52 = vmax.f32 %v1929_v46, %v1930_v7  ;;  %v1941_v59 = vadd.f32 %v1940_v41, %v1939_v57  ;;  %v1922_v3 = vadd.f32 %v1921_v2, %v1920_v0 }
 0xf85   : > { %v1950_v49 = vrot.slane %v1949_v45, 2  ;;  %v1932_v54 = vrot.slane %v1931_v52, 1  ;;  %v1942_v63 = vrot.slane %v1941_v59, 2  ;;  %v1923_v5 = vrot.slane %v1922_v3, 1 }
 0xf87   : > { %v1951_v50 = vmax.f32 %v1949_v45, %v1950_v49  ;;  %v1933_v56 = vmax.f32 %v1931_v52, %v1932_v54  ;;  %v1943_v1 = vadd.f32 %v1942_v63, %v1941_v59  ;;  %v1924_v6 = vadd.f32 %v1923_v5, %v1922_v3 }
 0xf89   : > { %v1952_v53 = vrot.slane %v1951_v50, 1  ;;  %v1944_v48 = vrot.slane %v1943_v1, 1  ;;  %v1926_v10 = vmul.f32 0.125, %v1924_v6 }
 0xf8b   : > { %v1953_v21 = vmax.f32 %v1951_v50, %v1952_v53  ;;  %v1945_v4 = vadd.f32 %v1944_v48, %v1943_v1 }
 0xf8d   : > { %1955 = vrot.lane.b32.xlu0 %v1953_v21, %s2512_s26  ;;  %v1946_v60 = vmul.f32 0.125, %v1945_v4 }
 0xf91   : > { %1935 = vrot.lane.b32.xlu0 %v1933_v56, %s2512_s26 }
 0xfff   : > { %v1956_v8 = vpop.permute.xlu0 %1955 }
0x1000   : > { %v1958_v9 = vsel %vm917_vm1, %v1946_v60, %v1956_v8 }
0x1001   : > { %v1960_v11 = vrot.slane %v1958_v9, 7 }
0x1003   : > { %v1936_v12 = vpop.permute.xlu0 %1935 }
0x1004   : > { %v1938_v13 = vsel %vm917_vm1, %v1926_v10, %v1936_v12 }
0x1005   : > { %v1963_v14 = vsel %vm1962_vm7, %v1938_v13, %v1960_v11 }
0x1006   : > { %1965 = vst.msk [vmem:[#allocation3] sm:$0x3] %vm1964_vm8, %v1963_v14 }
0x1007 PF: > { %s2994_s21 = sld [smem:[#allocation7_spill]]  ;;  %s2513_s2 = smov [#allocation3]  }
0x1008   : > { %s1975_s3 = sshll.u32 %s2513_s2, 4  ;;  %s1976_s3 = int_to_ptr.vmem [resolvable:$true] %s1975_s3 }
0x1009   : > { %s2455_s19 = scalar_lea.vmem %s1976_s3, 32  ;;  %p2462_p11 = scmp.lt.s32.totalorder %s1976_s3, %s1976_s3 }
0x100a   : > { %p2456_p8 = scmp.ne.s32.totalorder %s1976_s3, %s2455_s19  ;;  %p2463_p12 = scmp.lt.s32.totalorder %s2455_s19, %s2455_s19 }
0x100c   : > { %p2464_p13 = por %p2463_p12, %p2462_p11 }
0x100d   : > { %s2995_s30 = sadd.s32 4294967295, %s2994_s21  }
0x100e   : > { %p2913_p7 = scmp.eq.s32.totalorder %s2995_s30, 1 }
0x1010   : > { %p2457_p9 = pnand %p2456_p8, %p2913_p7 }
0x1012   : > { %p2458_p10 = pneg %p2457_p9 }
0x1014   : > { %p2465_p0 = pnand %p2464_p13, %p2458_p10 }
0x1016   : > { %2468 = shalt.err (!%p2465_p0)
}
0x1017   : > { %s2997_s20 = sld [smem:[#allocation16_spill]] }
0x101d   : > { %s2469_s27 = scalar_lea.hbm %s2997_s20, 32 }
0x101e   : > { %p2470_p1 = scmp.ne.s32.totalorder %s2997_s20, %s2469_s27  ;;  %p2475_p4 = scmp.lt.u32.totalorder %s2469_s27, %s2997_s20 }
0x1020   : > { %p2471_p2 = pnand %p2470_p1, %p2913_p7 }
0x1022   : > { %p2472_p3 = pneg %p2471_p2 }
0x1024   : > { %p2477_p5 = pnand %p2475_p4, %p2472_p3 }
0x1026   : > { %2480 = shalt.err (!%p2477_p5)
}
0x1027   : > { %2357 = dma.vmem_to_hbm [thread:$0]  (%p2913_p7), %s1976_s3, 32, %s2997_s20, [#allocation4]  }
0x1028   : > { %2494 = dma.done.wait (%p2913_p7), [#allocation4], 32  }
0x1029   : > { %2496 = vsyncadd (%p2913_p7), [#allocation4], 4294967264 }
0x102a PF: > { %s2998_s22 = sld [smem:[#allocation7_spill]]  ;;  %s2999_s21 = sld [smem:[#allocation6_spill]] }
0x1030   : > { %s27_s23 = sadd.s32 1, %s2998_s22   ;;  %s3000_s22 = sld [smem:[#allocation8_spill]] }
0x1031   : > { %p24_p6 = scmp.ge.s32.totalorder %s27_s23, 4  }
0x1033   :  { %26 = sbr.rel (!%p24_p6) target bundleno = 10 (0xa), region = 159 }
0x103a   :  { %1988 = vsyncpa [#allocation4], 1 }
0x103b   :  { %1990 = vsyncpa [#allocation4 + $0x1], 1 }

</bundles_post_ra>
